<compile_context>
chip_gen: v7x
topology: tpu7x:2x2x1
jax: 0.10.0
libtpu: 0.0.40
codegen_flags: <defaults>
</compile_context>

<pallas_src>
import functools

import jax
import jax.numpy as jnp
from jax.experimental import pallas as pl
from jax.experimental.pallas import tpu as pltpu


# ---------------------------------------------------------------------------
# Pallas kernel: one batch block, all T steps
# ---------------------------------------------------------------------------
def rnn_forward_kernel(
    # per-batch-block inputs (rows flattened time-major as (t, b))
    xin_ref,      # (T*BB, N_X+2) f32   packed per-step input: [x | treat | y-residual]
    demo_ref,     # (BB, N_S)     f32   raw static features
    h0_ref,       # (BB, H)       f32   initial GRU state (== f_old, never updated)
    # fused / pre-cast weights (built ONCE in the wrapper)
    w_in_ref,     # (N_X+2, XE+1) bf16  [x2emb | treat passthrough]; yres row is zero
    b_in_ref,     # (1, XE+1)     f32
    w_big_ref,    # (XE+1, 5H)    bf16  cols [r | z | n | ho | hx] over [x_emb | treat] rows
    w_cfold_ref,  # (H, 5H)       bf16  f_old rows of the same columns
    w_cdemo_ref,  # (N_S, 5H)     bf16  raw-demo rows (x_static2emb pre-folded); gate cols 0
    b_big_ref,    # (1, 5H)       f32   fused biases (b_hh r/z folded; b_hh_n kept apart)
    w_hh_ref,     # (H, 3H)       bf16  fused recurrent weight (single matmul per step)
    b_hh_n_ref,   # (1, H)        f32   applied inside r * (gh_n + b_hh_n)
    w_heads_ref,  # (2H, XP+NC)   bf16  block-diag: f_x rows -> x_new cols, f_h rows -> y col
    # outputs
    out_ref,      # (T*BB, OUT_W) f32   lane-dense slab: [f_h | x_new | y | 0-pad]
    h_final_ref,  # (BB, H)       f32   final GRU hidden state (diagnostic)
    # scratch
    gates_scr,    # (T*BB, 3H)    f32   gate pre-activations for the serial loop
    *, nc,
):
    f32, bf16 = jnp.float32, jnp.bfloat16
    BB, H = h0_ref.shape
    TB, n_in = xin_ref.shape
    T = TB // BB
    H5 = w_big_ref.shape[1]                       # 5H
    XP = w_heads_ref.shape[1] - nc
    OUT_W = out_ref.shape[1]

    def mm(a, b):
        return jnp.dot(a, b, preferred_element_type=f32)

    # ----------------- batched, non-recurrent path (all T steps at once) -----------------
    xin = xin_ref[...]                                           # (TB, N_X+2) f32
    yres = xin[:, n_in - 1:n_in]                                 # (TB, 1) f32 y-residual
    # stage 1: [x | treat | yres] -> [x_emb | treat]  (yres row of w_in is zero)
    xe_aug = mm(xin.astype(bf16), w_in_ref[...]) + b_in_ref[...]           # (TB, XE+1)
    # stage 2: fused input half of the gates + both hidden2hidden heads
    wide = mm(xe_aug.astype(bf16), w_big_ref[...])                          # (TB, 5H)

    # time-invariant half: f_old (frozen initial hidden) and demo contributions + biases
    f_old = h0_ref[...]                                                     # (BB, H) f32
    const = (mm(f_old.astype(bf16), w_cfold_ref[...])
             + mm(demo_ref[...].astype(bf16), w_cdemo_ref[...])
             + b_big_ref[...])                                              # (BB, 5H)
    wide = wide + jnp.broadcast_to(const[None], (T, BB, H5)).reshape(TB, H5)

    # gate pre-activations -> VMEM scratch (consumed per step by the serial loop)
    gates_scr[...] = wide[:, :3 * H]

    # heads: ReLU on the ho half, Softplus on the hx half (column-masked, single pass,
    # keeps [f_h | f_x] adjacent so the output heads fuse into one block-diag matmul)
    heads = wide[:, 3 * H:]                                                 # (TB, 2H)
    col = jax.lax.broadcasted_iota(jnp.int32, (1, 2 * H), 1)
    heads_act = jnp.where(col < H, jnp.maximum(heads, 0.0), jax.nn.softplus(heads))
    f_h_all = heads_act[:, :H]                                              # hidden2hidden_outcome_f
    xy = mm(heads_act.astype(bf16), w_heads_ref[...])                       # [x_new | y_pred]
    y_all = xy[:, XP:] + yres                                               # y-residual (0 at t=0)

    # single lane-dense store (unmasked 128-lane vst) instead of 3 narrow masked stores
    pieces = [f_h_all, xy[:, :XP], y_all]
    pad = OUT_W - (H + XP + nc)
    if pad:
        pieces.append(jnp.zeros((TB, pad), f32))
    out_ref[...] = jnp.concatenate(pieces, axis=-1)

    # ----------------- recurrence: only gh = f_hx @ W_hh is serial -----------------------
    w_hh = w_hh_ref[...]                                                    # (H, 3H) bf16
    b_hn = jnp.broadcast_to(b_hh_n_ref[...], (BB, H))                       # hoisted broadcast

    def step(t, f_hx):
        row0 = pl.multiple_of(t * BB, BB)
        g = gates_scr[pl.ds(row0, BB), :]                                   # (BB, 3H)
        gh = mm(f_hx.astype(bf16), w_hh)                                    # ONE fused matmul
        rz = jax.nn.sigmoid(g[:, :2 * H] + gh[:, :2 * H])                   # one EUP slab
        r, z = rz[:, :H], rz[:, H:]
        n = jnp.tanh(g[:, 2 * H:] + r * (gh[:, 2 * H:] + b_hn))
        return (1.0 - z) * n + z * f_hx

    # small static T -> fully unrolled but with LLO visibility; for large T lower `unroll`
    f_hx = jax.lax.fori_loop(0, T, step, f_old, unroll=True)
    h_final_ref[...] = f_hx


# ---------------------------------------------------------------------------
# Wrapper: weight fusion / casting + layout plumbing + pallas_call
# ---------------------------------------------------------------------------
def rnn_forward(x__, x_demo, f_treatment, y_, h0, params, batch_block=None):
    """Mirrors RNN.forward(x__, x_demo, f_treatment, y_) with cf_treatment=None, burn_in=None."""
    f32, bf16 = jnp.float32, jnp.bfloat16
    B, seq, n_x = x__.shape
    T = seq - 1                              # len_time
    H = h0.shape[-1]
    n_s = x_demo.shape[-1]
    n_classes = params["w_outy"].shape[-1]
    x_pred = params["w_outx"].shape[-1]
    XE = params["w_x2emb"].shape[-1]
    SE = params["w_demo"].shape[-1]

    def rup(a, m):
        return -(-a // m) * m

    # Adaptive batch block: up to 128 rows; >= 2 blocks when B allows it so the "parallel"
    # grid axis can shard across both TensorCores on v7x (no-op on v5e/v6e).
    if batch_block is None:
        bp8 = rup(B, 8)
        batch_block = 8 if bp8 <= 8 else min(128, rup(-(-bp8 // 2), 8))
    BB = batch_block
    G = -(-B // BB)
    Bp = G * BB
    padB = Bp - B

    xp = jnp.pad(x__.astype(f32), ((0, padB), (0, 0), (0, 0)))
    tp = jnp.pad(f_treatment.astype(f32), ((0, padB), (0, 0)))
    yp = jnp.pad(y_.astype(f32), ((0, padB), (0, 0)))
    dp = jnp.pad(x_demo.astype(f32), ((0, padB), (0, 0)))
    hp = jnp.pad(h0.astype(f32), ((0, padB), (0, 0)))

    # y-residual per step: 0 at t=0 (reference skips the residual at i==0), y[:, t] for t>=1.
    yres = jnp.concatenate([jnp.zeros((Bp, 1), f32), yp[:, 1:T]], axis=1)          # (Bp, T)

    # One packed per-step input slab [x | treat | yres] -> a single DMA stream per block.
    xin = jnp.concatenate([xp[:, :T, :], tp[:, :T, None], yres[:, :, None]], axis=-1)

    def to_blocks(a):        # (Bp, T, W) -> (G, T*BB, W), time-major rows within each block
        W = a.shape[-1]
        return a.reshape(G, BB, T, W).transpose(0, 2, 1, 3).reshape(G, T * BB, W)

    xin_blk = to_blocks(xin)                                                       # (G, T*BB, n_x+2)

    # ------------------ one-time fused weight packing / bf16 casting ------------------
    w_ih, b_ih = params["w_ih"], params["b_ih"]            # (XE+H+1, 3H) rows [x_emb|f_old|treat]
    w_hh, b_hh = params["w_hh"], params["b_hh"]            # (H, 3H)
    w_ho, b_ho = params["w_hout"], params["b_hout"]        # (XE+H+SE+1, H) rows [x_emb|f_old|demo|treat]
    w_hx, b_hx = params["w_hx"], params["b_hx"]
    w_demo, b_demo = params["w_demo"], params["b_demo"]    # (n_s, SE), (1, SE)
    ho_d = w_ho[XE + H:XE + H + SE]
    hx_d = w_hx[XE + H:XE + H + SE]

    # stage 1: [x | treat | yres] -> [x_emb | treat-passthrough]
    w_in = jnp.zeros((n_x + 2, XE + 1), f32)
    w_in = w_in.at[:n_x, :XE].set(params["w_x2emb"]).at[n_x, XE].set(1.0).astype(bf16)
    b_in = jnp.concatenate([params["b_x2emb"], jnp.zeros((1, 1), f32)], axis=1)

    # stage 2: cols [r | z | n | ho | hx] over [x_emb | treat] rows
    w_big = jnp.concatenate([
        jnp.concatenate([w_ih[:XE], w_ho[:XE], w_hx[:XE]], axis=1),
        jnp.concatenate([w_ih[XE + H:XE + H + 1],
                         w_ho[XE + H + SE:XE + H + SE + 1],
                         w_hx[XE + H + SE:XE + H + SE + 1]], axis=1),
    ], axis=0).astype(bf16)
    # f_old rows (constant over time — f_old is never updated in the reference)
    w_cfold = jnp.concatenate([w_ih[XE:XE + H], w_ho[XE:XE + H], w_hx[XE:XE + H]],
                              axis=1).astype(bf16)
    # raw-demo rows with x_static2emb pre-folded (Linear∘Linear == one Linear); gates cols 0
    w_cdemo = jnp.concatenate([jnp.zeros((n_s, 3 * H), f32), w_demo @ ho_d, w_demo @ hx_d],
                              axis=1).astype(bf16)
    b_big = jnp.concatenate([
        b_ih[:, :H] + b_hh[:, :H],                  # r: both biases fold
        b_ih[:, H:2 * H] + b_hh[:, H:2 * H],        # z: both biases fold
        b_ih[:, 2 * H:3 * H],                       # n: b_hh_n stays inside r*(...)
        b_ho + b_demo @ ho_d,
        b_hx + b_demo @ hx_d,
    ], axis=1)
    w_hh_b = w_hh.astype(bf16)
    b_hh_n = b_hh[:, 2 * H:3 * H]
    # fused output heads: rows [f_h | f_x] -> cols [x_new | y_pred] (block diagonal)
    w_heads = jnp.zeros((2 * H, x_pred + n_classes), f32)
    w_heads = (w_heads.at[H:, :x_pred].set(params["w_outx"])
                       .at[:H, x_pred:].set(params["w_outy"])).astype(bf16)

    OUT_W = rup(H + x_pred + n_classes, 128)        # lane-dense (unmasked) output stores

    weights = (w_in, b_in, w_big, w_cfold, w_cdemo, b_big, w_hh_b, b_hh_n, w_heads)

    in_specs = [
        pl.BlockSpec((None, T * BB, n_x + 2), lambda g: (g, 0, 0)),   # packed input slab
        pl.BlockSpec((BB, n_s), lambda g: (g, 0)),                    # raw demo
        pl.BlockSpec((BB, H), lambda g: (g, 0)),                      # h0 / f_old
    ] + [pl.BlockSpec(w.shape, lambda g: (0, 0)) for w in weights]

    out_shapes = (
        jax.ShapeDtypeStruct((G, T * BB, OUT_W), f32),                # packed [f_h|x_new|y|pad]
        jax.ShapeDtypeStruct((Bp, H), f32),                           # final GRU hidden (aux)
    )
    out_specs = (
        pl.BlockSpec((None, T * BB, OUT_W), lambda g: (g, 0, 0)),
        pl.BlockSpec((BB, H), lambda g: (g, 0)),
    )

    kernel = functools.partial(rnn_forward_kernel, nc=n_classes)

    out_blk, h_final_p = pl.pallas_call(
        kernel,
        out_shape=out_shapes,
        grid=(G,),
        in_specs=in_specs,
        out_specs=out_specs,
        scratch_shapes=[pltpu.VMEM((T * BB, 3 * H), jnp.float32)],
        compiler_params=pltpu.CompilerParams(
            dimension_semantics=("parallel",)),       # batch blocks shard across TCs (v7x)
    )(xin_blk, dp, hp, *weights)

    def from_blocks(a):      # (G, T*BB, W) -> (T, B, W)
        W = a.shape[-1]
        a = a.reshape(G, T, BB, W).transpose(1, 0, 2, 3).reshape(T, Bp, W)
        return a[:, :B]

    out = from_blocks(out_blk)                          # (T, B, OUT_W)
    f_h_stack = out[..., :H]                            # (T, B, H)
    x_new_stack = out[..., H:H + x_pred]                # (T, B, x_pred)
    y_stack = out[..., H + x_pred:H + x_pred + n_classes]   # (T, B, n_classes)
    h_final = h_final_p[:B]

    # Outputs are returned stacked over time (index [t] == the per-step list entry of the
    # PyTorch module) to avoid a host-side fan-out into T tiny arrays.
    a_or_ipw_outputs = [jnp.zeros((1,), f32)]
    f_outcome_out = y_stack
    cf_outcome_out = None                               # cf_treatment is None
    f_h = f_h_stack
    L_kl = jnp.zeros((1,), f32)
    # TODO(synk): x_out would be overwritten by compute_global (external, undefined);
    #             returned unchanged here.
    x_out = x__
    x_out_cf = jnp.zeros((1, 1), f32)
    aux = {"x_new_per_step": x_new_stack, "gru_h_final": h_final}
    return (a_or_ipw_outputs, f_outcome_out, cf_outcome_out, f_h, L_kl, x_out, x_out_cf), aux


# ---------------------------------------------------------------------------
# Deterministic parameter construction (PyTorch-style uniform fan-in init)
# ---------------------------------------------------------------------------
def init_params(key, n_x, n_s, s_emb, x_emb, hidden, n_classes, x_pred):
    gru_in = x_emb + 1 + hidden          # rnn_f input_size
    d_hid = x_emb + hidden + s_emb + 1   # == x_static_emb_size + 1 + h_dim (h_dim=64)

    def uniform(k, shape, bound):
        return jax.random.uniform(k, shape, jnp.float32, -bound, bound)

    ks = jax.random.split(key, 16)
    b = lambda fan_in: 1.0 / (fan_in ** 0.5)
    params = {
        "w_x2emb": uniform(ks[0], (n_x, x_emb), b(n_x)),
        "b_x2emb": uniform(ks[1], (1, x_emb), b(n_x)),
        "w_demo": uniform(ks[2], (n_s, s_emb), b(n_s)),
        "b_demo": uniform(ks[3], (1, s_emb), b(n_s)),
        "w_ih": uniform(ks[4], (gru_in, 3 * hidden), b(hidden)),     # gate order r, z, n
        "b_ih": uniform(ks[5], (1, 3 * hidden), b(hidden)),
        "w_hh": uniform(ks[6], (hidden, 3 * hidden), b(hidden)),
        "b_hh": uniform(ks[7], (1, 3 * hidden), b(hidden)),
        "w_hout": uniform(ks[8], (d_hid, hidden), b(d_hid)),
        "b_hout": uniform(ks[9], (1, hidden), b(d_hid)),
        "w_hx": uniform(ks[10], (d_hid, hidden), b(d_hid)),
        "b_hx": uniform(ks[11], (1, hidden), b(d_hid)),
        "w_outx": uniform(ks[12], (hidden, x_pred), b(hidden)),
        "w_outy": uniform(ks[13], (hidden, n_classes), b(hidden)),
    }
    return params


if __name__ == "__main__":
    # Small, shape-consistent configuration.
    B = 4              # batch
    T = 8              # len_time (sequence has T+1 steps)
    N_X = 16           # n_X_features
    N_S = 4            # n_X_static_features  -> x_static_emb_size = 4
    S_EMB = N_S
    X_EMB = 32         # x_emb_size
    H = 32             # hidden_size (must satisfy x_emb_size + hidden == 64)
    N_CLASSES = 1
    X_PRED = N_X       # x_dim_predicted (theory=False -> n_X_features)

    key = jax.random.PRNGKey(0)
    kx, kd, kt, ky, kh, kp = jax.random.split(key, 6)

    x__ = jax.random.normal(kx, (B, T + 1, N_X), jnp.float32)
    x_demo = jax.random.normal(kd, (B, N_S), jnp.float32)
    f_treatment = jax.random.bernoulli(kt, 0.5, (B, T)).astype(jnp.float32)
    y_ = jax.random.normal(ky, (B, T + 1), jnp.float32)
    h0 = jax.random.normal(kh, (B, H), jnp.float32)   # deterministic stand-in for torch.randn f_hx

    params = init_params(kp, N_X, N_S, S_EMB, X_EMB, H, N_CLASSES, X_PRED)

    outputs, aux = rnn_forward(x__, x_demo, f_treatment, y_, h0, params)
    jax.block_until_ready((outputs, aux))

    # Light sanity check (bf16 MXU path should still be finite everywhere).
    assert bool(jnp.all(jnp.isfinite(outputs[1]))), "non-finite outcome predictions"
    assert bool(jnp.all(jnp.isfinite(outputs[3]))), "non-finite f_h"
    print("KERNEL_OK")
</pallas_src>

<mosaic_0001>
module attributes {stable_mosaic.version = 11 : i64} {
  func.func @rnn_forward_kernel(%arg0: i32, %arg1: memref<1x64x18xf32, #tpu.memory_space<vmem>>, %arg2: memref<8x4xf32, #tpu.memory_space<vmem>>, %arg3: memref<8x32xf32, #tpu.memory_space<vmem>>, %arg4: memref<18x33xbf16, #tpu.memory_space<vmem>>, %arg5: memref<1x33xf32, #tpu.memory_space<vmem>>, %arg6: memref<33x160xbf16, #tpu.memory_space<vmem>>, %arg7: memref<32x160xbf16, #tpu.memory_space<vmem>>, %arg8: memref<4x160xbf16, #tpu.memory_space<vmem>>, %arg9: memref<1x160xf32, #tpu.memory_space<vmem>>, %arg10: memref<32x96xbf16, #tpu.memory_space<vmem>>, %arg11: memref<1x32xf32, #tpu.memory_space<vmem>>, %arg12: memref<64x17xbf16, #tpu.memory_space<vmem>>, %arg13: memref<1x64x128xf32, #tpu.memory_space<vmem>>, %arg14: memref<8x32xf32, #tpu.memory_space<vmem>>, %arg15: memref<64x96xf32, #tpu.memory_space<vmem>>) attributes {dimension_semantics = [#tpu.dimension_semantics<parallel>], iteration_bounds = array<i64: 1>, scalar_prefetch = 0 : i64, scratch_operands = 1 : i64, tpu.core_type = #tpu.core_type<tc>, window_params = [{transform_indices = @transform_0, window_bounds = array<i64: 1, 64, 18>}, {transform_indices = @transform_1, window_bounds = array<i64: 8, 4>}, {transform_indices = @transform_2, window_bounds = array<i64: 8, 32>}, {pipeline_mode = #tpu.pipeline_mode<synchronous>, transform_indices = @transform_3, window_bounds = array<i64: 18, 33>}, {pipeline_mode = #tpu.pipeline_mode<synchronous>, transform_indices = @transform_4, window_bounds = array<i64: 1, 33>}, {pipeline_mode = #tpu.pipeline_mode<synchronous>, transform_indices = @transform_5, window_bounds = array<i64: 33, 160>}, {pipeline_mode = #tpu.pipeline_mode<synchronous>, transform_indices = @transform_6, window_bounds = array<i64: 32, 160>}, {pipeline_mode = #tpu.pipeline_mode<synchronous>, transform_indices = @transform_7, window_bounds = array<i64: 4, 160>}, {pipeline_mode = #tpu.pipeline_mode<synchronous>, transform_indices = @transform_8, window_bounds = array<i64: 1, 160>}, {pipeline_mode = #tpu.pipeline_mode<synchronous>, transform_indices = @transform_9, window_bounds = array<i64: 32, 96>}, {pipeline_mode = #tpu.pipeline_mode<synchronous>, transform_indices = @transform_10, window_bounds = array<i64: 1, 32>}, {pipeline_mode = #tpu.pipeline_mode<synchronous>, transform_indices = @transform_11, window_bounds = array<i64: 64, 17>}, {transform_indices = @transform_12, window_bounds = array<i64: 1, 64, 128>}, {transform_indices = @transform_13, window_bounds = array<i64: 8, 32>}]} {
    %c0 = arith.constant 0 : index
    %c0_0 = arith.constant 0 : index
    %c0_1 = arith.constant 0 : index
    %0 = vector.load %arg1[%c0, %c0_0, %c0_1] : memref<1x64x18xf32, #tpu.memory_space<vmem>>, vector<1x64x18xf32>
    %1 = vector.shape_cast %0 : vector<1x64x18xf32> to vector<64x18xf32>
    %2 = vector.extract_strided_slice %1 {offsets = [0, 17], sizes = [64, 1], strides = [1, 1]} : vector<64x18xf32> to vector<64x1xf32>
    %3 = arith.truncf %1 : vector<64x18xf32> to vector<64x18xbf16>
    %c0_2 = arith.constant 0 : index
    %c0_3 = arith.constant 0 : index
    %4 = vector.load %arg4[%c0_2, %c0_3] : memref<18x33xbf16, #tpu.memory_space<vmem>>, vector<18x33xbf16>
    %cst = arith.constant dense<0.000000e+00> : vector<64x33xf32>
    %5 = tpu.matmul %3, %4, %cst {dimension_numbers = #tpu.dot_dimension_numbers<[1], [0], [0], [1], [0, 0, 1, 1], [], []>} : vector<64x18xbf16>, vector<18x33xbf16>, vector<64x33xf32> -> vector<64x33xf32>
    %c0_4 = arith.constant 0 : index
    %c0_5 = arith.constant 0 : index
    %6 = vector.load %arg5[%c0_4, %c0_5] : memref<1x33xf32, #tpu.memory_space<vmem>>, vector<1x33xf32>
    %7 = vector.broadcast %6 : vector<1x33xf32> to vector<64x33xf32>
    %8 = arith.addf %5, %7 : vector<64x33xf32>
    %9 = arith.truncf %8 : vector<64x33xf32> to vector<64x33xbf16>
    %c0_6 = arith.constant 0 : index
    %c0_7 = arith.constant 0 : index
    %10 = vector.load %arg6[%c0_6, %c0_7] : memref<33x160xbf16, #tpu.memory_space<vmem>>, vector<33x160xbf16>
    %cst_8 = arith.constant dense<0.000000e+00> : vector<64x160xf32>
    %11 = tpu.matmul %9, %10, %cst_8 {dimension_numbers = #tpu.dot_dimension_numbers<[1], [0], [0], [1], [0, 0, 1, 1], [], []>} : vector<64x33xbf16>, vector<33x160xbf16>, vector<64x160xf32> -> vector<64x160xf32>
    %c0_9 = arith.constant 0 : index
    %c0_10 = arith.constant 0 : index
    %12 = vector.load %arg3[%c0_9, %c0_10] : memref<8x32xf32, #tpu.memory_space<vmem>>, vector<8x32xf32>
    %13 = arith.truncf %12 : vector<8x32xf32> to vector<8x32xbf16>
    %c0_11 = arith.constant 0 : index
    %c0_12 = arith.constant 0 : index
    %14 = vector.load %arg7[%c0_11, %c0_12] : memref<32x160xbf16, #tpu.memory_space<vmem>>, vector<32x160xbf16>
    %cst_13 = arith.constant dense<0.000000e+00> : vector<8x160xf32>
    %15 = tpu.matmul %13, %14, %cst_13 {dimension_numbers = #tpu.dot_dimension_numbers<[1], [0], [0], [1], [0, 0, 1, 1], [], []>} : vector<8x32xbf16>, vector<32x160xbf16>, vector<8x160xf32> -> vector<8x160xf32>
    %c0_14 = arith.constant 0 : index
    %c0_15 = arith.constant 0 : index
    %16 = vector.load %arg2[%c0_14, %c0_15] : memref<8x4xf32, #tpu.memory_space<vmem>>, vector<8x4xf32>
    %17 = arith.truncf %16 : vector<8x4xf32> to vector<8x4xbf16>
    %c0_16 = arith.constant 0 : index
    %c0_17 = arith.constant 0 : index
    %18 = vector.load %arg8[%c0_16, %c0_17] : memref<4x160xbf16, #tpu.memory_space<vmem>>, vector<4x160xbf16>
    %cst_18 = arith.constant dense<0.000000e+00> : vector<8x160xf32>
    %19 = tpu.matmul %17, %18, %cst_18 {dimension_numbers = #tpu.dot_dimension_numbers<[1], [0], [0], [1], [0, 0, 1, 1], [], []>} : vector<8x4xbf16>, vector<4x160xbf16>, vector<8x160xf32> -> vector<8x160xf32>
    %20 = arith.addf %15, %19 : vector<8x160xf32>
    %c0_19 = arith.constant 0 : index
    %c0_20 = arith.constant 0 : index
    %21 = vector.load %arg9[%c0_19, %c0_20] : memref<1x160xf32, #tpu.memory_space<vmem>>, vector<1x160xf32>
    %22 = vector.broadcast %21 : vector<1x160xf32> to vector<8x160xf32>
    %23 = arith.addf %20, %22 : vector<8x160xf32>
    %24 = vector.shape_cast %23 : vector<8x160xf32> to vector<1x8x160xf32>
    %25 = vector.shape_cast %24 : vector<1x8x160xf32> to vector<1x8x160xf32>
    %26 = vector.broadcast %25 : vector<1x8x160xf32> to vector<8x8x160xf32>
    %27 = vector.shape_cast %26 : vector<8x8x160xf32> to vector<64x160xf32>
    %28 = arith.addf %11, %27 : vector<64x160xf32>
    %29 = vector.extract_strided_slice %28 {offsets = [0, 0], sizes = [64, 96], strides = [1, 1]} : vector<64x160xf32> to vector<64x96xf32>
    %c0_21 = arith.constant 0 : index
    %c0_22 = arith.constant 0 : index
    %30 = vector.load %arg15[%c0_21, %c0_22] : memref<64x96xf32, #tpu.memory_space<vmem>>, vector<64x96xf32>
    tpu.vector_store %arg15[%c0_21, %c0_22], %29 {strides = array<i32>} : memref<64x96xf32, #tpu.memory_space<vmem>>, vector<64x96xf32>,
    %31 = vector.extract_strided_slice %28 {offsets = [0, 96], sizes = [64, 64], strides = [1, 1]} : vector<64x160xf32> to vector<64x64xf32>
    %32 = tpu.iota {dimensions = array<i32: 1>} : vector<1x64xi32>
    %c32_i32 = arith.constant 32 : i32
    %33 = vector.broadcast %c32_i32 : i32 to vector<1x64xi32>
    %34 = arith.cmpi slt, %32, %33 : vector<1x64xi32>
    %cst_23 = arith.constant 0.000000e+00 : f32
    %35 = vector.broadcast %cst_23 : f32 to vector<64x64xf32>
    %36 = arith.maximumf %31, %35 : vector<64x64xf32>
    %cst_24 = arith.constant 0.000000e+00 : f32
    %37 = vector.broadcast %cst_24 : f32 to vector<64x64xf32>
    %38 = arith.maximumf %31, %37 : vector<64x64xf32>
    %39 = vector.broadcast %cst_24 : f32 to vector<64x64xf32>
    %40 = arith.subf %31, %39 : vector<64x64xf32>
    %41 = arith.cmpf one, %40, %40 : vector<64x64xf32>
    %42 = vector.broadcast %cst_24 : f32 to vector<64x64xf32>
    %43 = arith.addf %31, %42 : vector<64x64xf32>
    %44 = math.absf %40 : vector<64x64xf32>
    %cst_25 = arith.constant 0.000000e+00 : f32
    %45 = vector.broadcast %cst_25 : f32 to vector<64x64xf32>
    %46 = arith.subf %45, %44 : vector<64x64xf32>
    %47 = math.exp %46 : vector<64x64xf32>
    %48 = math.log1p %47 : vector<64x64xf32>
    %49 = arith.addf %38, %48 : vector<64x64xf32>
    %50 = arith.select %41, %43, %49 : vector<64x64xi1>, vector<64x64xf32>
    %51 = vector.shape_cast %34 : vector<1x64xi1> to vector<1x64xi1>
    %52 = vector.broadcast %51 : vector<1x64xi1> to vector<64x64xi1>
    %53 = arith.select %52, %36, %50 : vector<64x64xi1>, vector<64x64xf32>
    %54 = vector.extract_strided_slice %53 {offsets = [0, 0], sizes = [64, 32], strides = [1, 1]} : vector<64x64xf32> to vector<64x32xf32>
    %55 = arith.truncf %53 : vector<64x64xf32> to vector<64x64xbf16>
    %c0_26 = arith.constant 0 : index
    %c0_27 = arith.constant 0 : index
    %56 = vector.load %arg12[%c0_26, %c0_27] : memref<64x17xbf16, #tpu.memory_space<vmem>>, vector<64x17xbf16>
    %cst_28 = arith.constant dense<0.000000e+00> : vector<64x17xf32>
    %57 = tpu.matmul %55, %56, %cst_28 {dimension_numbers = #tpu.dot_dimension_numbers<[1], [0], [0], [1], [0, 0, 1, 1], [], []>} : vector<64x64xbf16>, vector<64x17xbf16>, vector<64x17xf32> -> vector<64x17xf32>
    %58 = vector.extract_strided_slice %57 {offsets = [0, 16], sizes = [64, 1], strides = [1, 1]} : vector<64x17xf32> to vector<64x1xf32>
    %59 = arith.addf %58, %2 : vector<64x1xf32>
    %60 = vector.extract_strided_slice %57 {offsets = [0, 0], sizes = [64, 16], strides = [1, 1]} : vector<64x17xf32> to vector<64x16xf32>
    %cst_29 = arith.constant 0.000000e+00 : f32
    %61 = vector.broadcast %cst_29 : f32 to vector<64x79xf32>
    %62 = tpu.concatenate %54, %60, %59, %61 in 1 : vector<64x32xf32>, vector<64x16xf32>, vector<64x1xf32>, vector<64x79xf32> -> vector<64x128xf32>
    %c0_30 = arith.constant 0 : index
    %c0_31 = arith.constant 0 : index
    %c0_32 = arith.constant 0 : index
    %63 = vector.load %arg13[%c0_30, %c0_31, %c0_32] : memref<1x64x128xf32, #tpu.memory_space<vmem>>, vector<1x64x128xf32>
    %64 = vector.shape_cast %63 : vector<1x64x128xf32> to vector<64x128xf32>
    %65 = vector.shape_cast %62 : vector<64x128xf32> to vector<1x64x128xf32>
    tpu.vector_store %arg13[%c0_30, %c0_31, %c0_32], %65 {strides = array<i32>} : memref<1x64x128xf32, #tpu.memory_space<vmem>>, vector<1x64x128xf32>,
    %c0_33 = arith.constant 0 : index
    %c0_34 = arith.constant 0 : index
    %66 = vector.load %arg10[%c0_33, %c0_34] : memref<32x96xbf16, #tpu.memory_space<vmem>>, vector<32x96xbf16>
    %c0_35 = arith.constant 0 : index
    %c0_36 = arith.constant 0 : index
    %67 = vector.load %arg11[%c0_35, %c0_36] : memref<1x32xf32, #tpu.memory_space<vmem>>, vector<1x32xf32>
    %68 = vector.shape_cast %67 : vector<1x32xf32> to vector<1x32xf32>
    %69 = vector.broadcast %68 : vector<1x32xf32> to vector<8x32xf32>
    %c0_i32 = arith.constant 0 : i32
    %c8_i32 = arith.constant 8 : i32
    %70 = arith.muli %c0_i32, %c8_i32 : i32
    %71 = tpu.assume_multiple %70, 8 : i32
    %72 = arith.index_cast %71 : i32 to index
    %c0_37 = arith.constant 0 : index
    %73 = vector.load %arg15[%72, %c0_37] : memref<64x96xf32, #tpu.memory_space<vmem>>, vector<8x96xf32>
    %74 = arith.truncf %12 : vector<8x32xf32> to vector<8x32xbf16>
    %cst_38 = arith.constant dense<0.000000e+00> : vector<8x96xf32>
    %75 = tpu.matmul %74, %66, %cst_38 {dimension_numbers = #tpu.dot_dimension_numbers<[1], [0], [0], [1], [0, 0, 1, 1], [], []>} : vector<8x32xbf16>, vector<32x96xbf16>, vector<8x96xf32> -> vector<8x96xf32>
    %76 = vector.extract_strided_slice %73 {offsets = [0, 0], sizes = [8, 64], strides = [1, 1]} : vector<8x96xf32> to vector<8x64xf32>
    %77 = vector.extract_strided_slice %75 {offsets = [0, 0], sizes = [8, 64], strides = [1, 1]} : vector<8x96xf32> to vector<8x64xf32>
    %78 = arith.addf %76, %77 : vector<8x64xf32>
    %79 = arith.negf %78 : vector<8x64xf32>
    %80 = math.exp %79 : vector<8x64xf32>
    %cst_39 = arith.constant 1.000000e+00 : f32
    %81 = vector.broadcast %cst_39 : f32 to vector<8x64xf32>
    %82 = arith.addf %81, %80 : vector<8x64xf32>
    %83 = arith.divf %81, %82 : vector<8x64xf32>
    %84 = vector.extract_strided_slice %83 {offsets = [0, 0], sizes = [8, 32], strides = [1, 1]} : vector<8x64xf32> to vector<8x32xf32>
    %85 = vector.extract_strided_slice %83 {offsets = [0, 32], sizes = [8, 32], strides = [1, 1]} : vector<8x64xf32> to vector<8x32xf32>
    %86 = vector.extract_strided_slice %73 {offsets = [0, 64], sizes = [8, 32], strides = [1, 1]} : vector<8x96xf32> to vector<8x32xf32>
    %87 = vector.extract_strided_slice %75 {offsets = [0, 64], sizes = [8, 32], strides = [1, 1]} : vector<8x96xf32> to vector<8x32xf32>
    %88 = arith.addf %87, %69 : vector<8x32xf32>
    %89 = arith.mulf %84, %88 : vector<8x32xf32>
    %90 = arith.addf %86, %89 : vector<8x32xf32>
    %91 = math.tanh %90 : vector<8x32xf32>
    %cst_40 = arith.constant 1.000000e+00 : f32
    %92 = vector.broadcast %cst_40 : f32 to vector<8x32xf32>
    %93 = arith.subf %92, %85 : vector<8x32xf32>
    %94 = arith.mulf %93, %91 : vector<8x32xf32>
    %95 = arith.mulf %85, %12 : vector<8x32xf32>
    %96 = arith.addf %94, %95 : vector<8x32xf32>
    %c1_i32 = arith.constant 1 : i32
    %c8_i32_41 = arith.constant 8 : i32
    %97 = arith.muli %c1_i32, %c8_i32_41 : i32
    %98 = tpu.assume_multiple %97, 8 : i32
    %99 = arith.index_cast %98 : i32 to index
    %c0_42 = arith.constant 0 : index
    %100 = vector.load %arg15[%99, %c0_42] : memref<64x96xf32, #tpu.memory_space<vmem>>, vector<8x96xf32>
    %101 = arith.truncf %96 : vector<8x32xf32> to vector<8x32xbf16>
    %cst_43 = arith.constant dense<0.000000e+00> : vector<8x96xf32>
    %102 = tpu.matmul %101, %66, %cst_43 {dimension_numbers = #tpu.dot_dimension_numbers<[1], [0], [0], [1], [0, 0, 1, 1], [], []>} : vector<8x32xbf16>, vector<32x96xbf16>, vector<8x96xf32> -> vector<8x96xf32>
    %103 = vector.extract_strided_slice %100 {offsets = [0, 0], sizes = [8, 64], strides = [1, 1]} : vector<8x96xf32> to vector<8x64xf32>
    %104 = vector.extract_strided_slice %102 {offsets = [0, 0], sizes = [8, 64], strides = [1, 1]} : vector<8x96xf32> to vector<8x64xf32>
    %105 = arith.addf %103, %104 : vector<8x64xf32>
    %106 = arith.negf %105 : vector<8x64xf32>
    %107 = math.exp %106 : vector<8x64xf32>
    %cst_44 = arith.constant 1.000000e+00 : f32
    %108 = vector.broadcast %cst_44 : f32 to vector<8x64xf32>
    %109 = arith.addf %108, %107 : vector<8x64xf32>
    %110 = arith.divf %108, %109 : vector<8x64xf32>
    %111 = vector.extract_strided_slice %110 {offsets = [0, 0], sizes = [8, 32], strides = [1, 1]} : vector<8x64xf32> to vector<8x32xf32>
    %112 = vector.extract_strided_slice %110 {offsets = [0, 32], sizes = [8, 32], strides = [1, 1]} : vector<8x64xf32> to vector<8x32xf32>
    %113 = vector.extract_strided_slice %100 {offsets = [0, 64], sizes = [8, 32], strides = [1, 1]} : vector<8x96xf32> to vector<8x32xf32>
    %114 = vector.extract_strided_slice %102 {offsets = [0, 64], sizes = [8, 32], strides = [1, 1]} : vector<8x96xf32> to vector<8x32xf32>
    %115 = arith.addf %114, %69 : vector<8x32xf32>
    %116 = arith.mulf %111, %115 : vector<8x32xf32>
    %117 = arith.addf %113, %116 : vector<8x32xf32>
    %118 = math.tanh %117 : vector<8x32xf32>
    %cst_45 = arith.constant 1.000000e+00 : f32
    %119 = vector.broadcast %cst_45 : f32 to vector<8x32xf32>
    %120 = arith.subf %119, %112 : vector<8x32xf32>
    %121 = arith.mulf %120, %118 : vector<8x32xf32>
    %122 = arith.mulf %112, %96 : vector<8x32xf32>
    %123 = arith.addf %121, %122 : vector<8x32xf32>
    %c2_i32 = arith.constant 2 : i32
    %c8_i32_46 = arith.constant 8 : i32
    %124 = arith.muli %c2_i32, %c8_i32_46 : i32
    %125 = tpu.assume_multiple %124, 8 : i32
    %126 = arith.index_cast %125 : i32 to index
    %c0_47 = arith.constant 0 : index
    %127 = vector.load %arg15[%126, %c0_47] : memref<64x96xf32, #tpu.memory_space<vmem>>, vector<8x96xf32>
    %128 = arith.truncf %123 : vector<8x32xf32> to vector<8x32xbf16>
    %cst_48 = arith.constant dense<0.000000e+00> : vector<8x96xf32>
    %129 = tpu.matmul %128, %66, %cst_48 {dimension_numbers = #tpu.dot_dimension_numbers<[1], [0], [0], [1], [0, 0, 1, 1], [], []>} : vector<8x32xbf16>, vector<32x96xbf16>, vector<8x96xf32> -> vector<8x96xf32>
    %130 = vector.extract_strided_slice %127 {offsets = [0, 0], sizes = [8, 64], strides = [1, 1]} : vector<8x96xf32> to vector<8x64xf32>
    %131 = vector.extract_strided_slice %129 {offsets = [0, 0], sizes = [8, 64], strides = [1, 1]} : vector<8x96xf32> to vector<8x64xf32>
    %132 = arith.addf %130, %131 : vector<8x64xf32>
    %133 = arith.negf %132 : vector<8x64xf32>
    %134 = math.exp %133 : vector<8x64xf32>
    %cst_49 = arith.constant 1.000000e+00 : f32
    %135 = vector.broadcast %cst_49 : f32 to vector<8x64xf32>
    %136 = arith.addf %135, %134 : vector<8x64xf32>
    %137 = arith.divf %135, %136 : vector<8x64xf32>
    %138 = vector.extract_strided_slice %137 {offsets = [0, 0], sizes = [8, 32], strides = [1, 1]} : vector<8x64xf32> to vector<8x32xf32>
    %139 = vector.extract_strided_slice %137 {offsets = [0, 32], sizes = [8, 32], strides = [1, 1]} : vector<8x64xf32> to vector<8x32xf32>
    %140 = vector.extract_strided_slice %127 {offsets = [0, 64], sizes = [8, 32], strides = [1, 1]} : vector<8x96xf32> to vector<8x32xf32>
    %141 = vector.extract_strided_slice %129 {offsets = [0, 64], sizes = [8, 32], strides = [1, 1]} : vector<8x96xf32> to vector<8x32xf32>
    %142 = arith.addf %141, %69 : vector<8x32xf32>
    %143 = arith.mulf %138, %142 : vector<8x32xf32>
    %144 = arith.addf %140, %143 : vector<8x32xf32>
    %145 = math.tanh %144 : vector<8x32xf32>
    %cst_50 = arith.constant 1.000000e+00 : f32
    %146 = vector.broadcast %cst_50 : f32 to vector<8x32xf32>
    %147 = arith.subf %146, %139 : vector<8x32xf32>
    %148 = arith.mulf %147, %145 : vector<8x32xf32>
    %149 = arith.mulf %139, %123 : vector<8x32xf32>
    %150 = arith.addf %148, %149 : vector<8x32xf32>
    %c3_i32 = arith.constant 3 : i32
    %c8_i32_51 = arith.constant 8 : i32
    %151 = arith.muli %c3_i32, %c8_i32_51 : i32
    %152 = tpu.assume_multiple %151, 8 : i32
    %153 = arith.index_cast %152 : i32 to index
    %c0_52 = arith.constant 0 : index
    %154 = vector.load %arg15[%153, %c0_52] : memref<64x96xf32, #tpu.memory_space<vmem>>, vector<8x96xf32>
    %155 = arith.truncf %150 : vector<8x32xf32> to vector<8x32xbf16>
    %cst_53 = arith.constant dense<0.000000e+00> : vector<8x96xf32>
    %156 = tpu.matmul %155, %66, %cst_53 {dimension_numbers = #tpu.dot_dimension_numbers<[1], [0], [0], [1], [0, 0, 1, 1], [], []>} : vector<8x32xbf16>, vector<32x96xbf16>, vector<8x96xf32> -> vector<8x96xf32>
    %157 = vector.extract_strided_slice %154 {offsets = [0, 0], sizes = [8, 64], strides = [1, 1]} : vector<8x96xf32> to vector<8x64xf32>
    %158 = vector.extract_strided_slice %156 {offsets = [0, 0], sizes = [8, 64], strides = [1, 1]} : vector<8x96xf32> to vector<8x64xf32>
    %159 = arith.addf %157, %158 : vector<8x64xf32>
    %160 = arith.negf %159 : vector<8x64xf32>
    %161 = math.exp %160 : vector<8x64xf32>
    %cst_54 = arith.constant 1.000000e+00 : f32
    %162 = vector.broadcast %cst_54 : f32 to vector<8x64xf32>
    %163 = arith.addf %162, %161 : vector<8x64xf32>
    %164 = arith.divf %162, %163 : vector<8x64xf32>
    %165 = vector.extract_strided_slice %164 {offsets = [0, 0], sizes = [8, 32], strides = [1, 1]} : vector<8x64xf32> to vector<8x32xf32>
    %166 = vector.extract_strided_slice %164 {offsets = [0, 32], sizes = [8, 32], strides = [1, 1]} : vector<8x64xf32> to vector<8x32xf32>
    %167 = vector.extract_strided_slice %154 {offsets = [0, 64], sizes = [8, 32], strides = [1, 1]} : vector<8x96xf32> to vector<8x32xf32>
    %168 = vector.extract_strided_slice %156 {offsets = [0, 64], sizes = [8, 32], strides = [1, 1]} : vector<8x96xf32> to vector<8x32xf32>
    %169 = arith.addf %168, %69 : vector<8x32xf32>
    %170 = arith.mulf %165, %169 : vector<8x32xf32>
    %171 = arith.addf %167, %170 : vector<8x32xf32>
    %172 = math.tanh %171 : vector<8x32xf32>
    %cst_55 = arith.constant 1.000000e+00 : f32
    %173 = vector.broadcast %cst_55 : f32 to vector<8x32xf32>
    %174 = arith.subf %173, %166 : vector<8x32xf32>
    %175 = arith.mulf %174, %172 : vector<8x32xf32>
    %176 = arith.mulf %166, %150 : vector<8x32xf32>
    %177 = arith.addf %175, %176 : vector<8x32xf32>
    %c4_i32 = arith.constant 4 : i32
    %c8_i32_56 = arith.constant 8 : i32
    %178 = arith.muli %c4_i32, %c8_i32_56 : i32
    %179 = tpu.assume_multiple %178, 8 : i32
    %180 = arith.index_cast %179 : i32 to index
    %c0_57 = arith.constant 0 : index
    %181 = vector.load %arg15[%180, %c0_57] : memref<64x96xf32, #tpu.memory_space<vmem>>, vector<8x96xf32>
    %182 = arith.truncf %177 : vector<8x32xf32> to vector<8x32xbf16>
    %cst_58 = arith.constant dense<0.000000e+00> : vector<8x96xf32>
    %183 = tpu.matmul %182, %66, %cst_58 {dimension_numbers = #tpu.dot_dimension_numbers<[1], [0], [0], [1], [0, 0, 1, 1], [], []>} : vector<8x32xbf16>, vector<32x96xbf16>, vector<8x96xf32> -> vector<8x96xf32>
    %184 = vector.extract_strided_slice %181 {offsets = [0, 0], sizes = [8, 64], strides = [1, 1]} : vector<8x96xf32> to vector<8x64xf32>
    %185 = vector.extract_strided_slice %183 {offsets = [0, 0], sizes = [8, 64], strides = [1, 1]} : vector<8x96xf32> to vector<8x64xf32>
    %186 = arith.addf %184, %185 : vector<8x64xf32>
    %187 = arith.negf %186 : vector<8x64xf32>
    %188 = math.exp %187 : vector<8x64xf32>
    %cst_59 = arith.constant 1.000000e+00 : f32
    %189 = vector.broadcast %cst_59 : f32 to vector<8x64xf32>
    %190 = arith.addf %189, %188 : vector<8x64xf32>
    %191 = arith.divf %189, %190 : vector<8x64xf32>
    %192 = vector.extract_strided_slice %191 {offsets = [0, 0], sizes = [8, 32], strides = [1, 1]} : vector<8x64xf32> to vector<8x32xf32>
    %193 = vector.extract_strided_slice %191 {offsets = [0, 32], sizes = [8, 32], strides = [1, 1]} : vector<8x64xf32> to vector<8x32xf32>
    %194 = vector.extract_strided_slice %181 {offsets = [0, 64], sizes = [8, 32], strides = [1, 1]} : vector<8x96xf32> to vector<8x32xf32>
    %195 = vector.extract_strided_slice %183 {offsets = [0, 64], sizes = [8, 32], strides = [1, 1]} : vector<8x96xf32> to vector<8x32xf32>
    %196 = arith.addf %195, %69 : vector<8x32xf32>
    %197 = arith.mulf %192, %196 : vector<8x32xf32>
    %198 = arith.addf %194, %197 : vector<8x32xf32>
    %199 = math.tanh %198 : vector<8x32xf32>
    %cst_60 = arith.constant 1.000000e+00 : f32
    %200 = vector.broadcast %cst_60 : f32 to vector<8x32xf32>
    %201 = arith.subf %200, %193 : vector<8x32xf32>
    %202 = arith.mulf %201, %199 : vector<8x32xf32>
    %203 = arith.mulf %193, %177 : vector<8x32xf32>
    %204 = arith.addf %202, %203 : vector<8x32xf32>
    %c5_i32 = arith.constant 5 : i32
    %c8_i32_61 = arith.constant 8 : i32
    %205 = arith.muli %c5_i32, %c8_i32_61 : i32
    %206 = tpu.assume_multiple %205, 8 : i32
    %207 = arith.index_cast %206 : i32 to index
    %c0_62 = arith.constant 0 : index
    %208 = vector.load %arg15[%207, %c0_62] : memref<64x96xf32, #tpu.memory_space<vmem>>, vector<8x96xf32>
    %209 = arith.truncf %204 : vector<8x32xf32> to vector<8x32xbf16>
    %cst_63 = arith.constant dense<0.000000e+00> : vector<8x96xf32>
    %210 = tpu.matmul %209, %66, %cst_63 {dimension_numbers = #tpu.dot_dimension_numbers<[1], [0], [0], [1], [0, 0, 1, 1], [], []>} : vector<8x32xbf16>, vector<32x96xbf16>, vector<8x96xf32> -> vector<8x96xf32>
    %211 = vector.extract_strided_slice %208 {offsets = [0, 0], sizes = [8, 64], strides = [1, 1]} : vector<8x96xf32> to vector<8x64xf32>
    %212 = vector.extract_strided_slice %210 {offsets = [0, 0], sizes = [8, 64], strides = [1, 1]} : vector<8x96xf32> to vector<8x64xf32>
    %213 = arith.addf %211, %212 : vector<8x64xf32>
    %214 = arith.negf %213 : vector<8x64xf32>
    %215 = math.exp %214 : vector<8x64xf32>
    %cst_64 = arith.constant 1.000000e+00 : f32
    %216 = vector.broadcast %cst_64 : f32 to vector<8x64xf32>
    %217 = arith.addf %216, %215 : vector<8x64xf32>
    %218 = arith.divf %216, %217 : vector<8x64xf32>
    %219 = vector.extract_strided_slice %218 {offsets = [0, 0], sizes = [8, 32], strides = [1, 1]} : vector<8x64xf32> to vector<8x32xf32>
    %220 = vector.extract_strided_slice %218 {offsets = [0, 32], sizes = [8, 32], strides = [1, 1]} : vector<8x64xf32> to vector<8x32xf32>
    %221 = vector.extract_strided_slice %208 {offsets = [0, 64], sizes = [8, 32], strides = [1, 1]} : vector<8x96xf32> to vector<8x32xf32>
    %222 = vector.extract_strided_slice %210 {offsets = [0, 64], sizes = [8, 32], strides = [1, 1]} : vector<8x96xf32> to vector<8x32xf32>
    %223 = arith.addf %222, %69 : vector<8x32xf32>
    %224 = arith.mulf %219, %223 : vector<8x32xf32>
    %225 = arith.addf %221, %224 : vector<8x32xf32>
    %226 = math.tanh %225 : vector<8x32xf32>
    %cst_65 = arith.constant 1.000000e+00 : f32
    %227 = vector.broadcast %cst_65 : f32 to vector<8x32xf32>
    %228 = arith.subf %227, %220 : vector<8x32xf32>
    %229 = arith.mulf %228, %226 : vector<8x32xf32>
    %230 = arith.mulf %220, %204 : vector<8x32xf32>
    %231 = arith.addf %229, %230 : vector<8x32xf32>
    %c6_i32 = arith.constant 6 : i32
    %c8_i32_66 = arith.constant 8 : i32
    %232 = arith.muli %c6_i32, %c8_i32_66 : i32
    %233 = tpu.assume_multiple %232, 8 : i32
    %234 = arith.index_cast %233 : i32 to index
    %c0_67 = arith.constant 0 : index
    %235 = vector.load %arg15[%234, %c0_67] : memref<64x96xf32, #tpu.memory_space<vmem>>, vector<8x96xf32>
    %236 = arith.truncf %231 : vector<8x32xf32> to vector<8x32xbf16>
    %cst_68 = arith.constant dense<0.000000e+00> : vector<8x96xf32>
    %237 = tpu.matmul %236, %66, %cst_68 {dimension_numbers = #tpu.dot_dimension_numbers<[1], [0], [0], [1], [0, 0, 1, 1], [], []>} : vector<8x32xbf16>, vector<32x96xbf16>, vector<8x96xf32> -> vector<8x96xf32>
    %238 = vector.extract_strided_slice %235 {offsets = [0, 0], sizes = [8, 64], strides = [1, 1]} : vector<8x96xf32> to vector<8x64xf32>
    %239 = vector.extract_strided_slice %237 {offsets = [0, 0], sizes = [8, 64], strides = [1, 1]} : vector<8x96xf32> to vector<8x64xf32>
    %240 = arith.addf %238, %239 : vector<8x64xf32>
    %241 = arith.negf %240 : vector<8x64xf32>
    %242 = math.exp %241 : vector<8x64xf32>
    %cst_69 = arith.constant 1.000000e+00 : f32
    %243 = vector.broadcast %cst_69 : f32 to vector<8x64xf32>
    %244 = arith.addf %243, %242 : vector<8x64xf32>
    %245 = arith.divf %243, %244 : vector<8x64xf32>
    %246 = vector.extract_strided_slice %245 {offsets = [0, 0], sizes = [8, 32], strides = [1, 1]} : vector<8x64xf32> to vector<8x32xf32>
    %247 = vector.extract_strided_slice %245 {offsets = [0, 32], sizes = [8, 32], strides = [1, 1]} : vector<8x64xf32> to vector<8x32xf32>
    %248 = vector.extract_strided_slice %235 {offsets = [0, 64], sizes = [8, 32], strides = [1, 1]} : vector<8x96xf32> to vector<8x32xf32>
    %249 = vector.extract_strided_slice %237 {offsets = [0, 64], sizes = [8, 32], strides = [1, 1]} : vector<8x96xf32> to vector<8x32xf32>
    %250 = arith.addf %249, %69 : vector<8x32xf32>
    %251 = arith.mulf %246, %250 : vector<8x32xf32>
    %252 = arith.addf %248, %251 : vector<8x32xf32>
    %253 = math.tanh %252 : vector<8x32xf32>
    %cst_70 = arith.constant 1.000000e+00 : f32
    %254 = vector.broadcast %cst_70 : f32 to vector<8x32xf32>
    %255 = arith.subf %254, %247 : vector<8x32xf32>
    %256 = arith.mulf %255, %253 : vector<8x32xf32>
    %257 = arith.mulf %247, %231 : vector<8x32xf32>
    %258 = arith.addf %256, %257 : vector<8x32xf32>
    %c7_i32 = arith.constant 7 : i32
    %c8_i32_71 = arith.constant 8 : i32
    %259 = arith.muli %c7_i32, %c8_i32_71 : i32
    %260 = tpu.assume_multiple %259, 8 : i32
    %261 = arith.index_cast %260 : i32 to index
    %c0_72 = arith.constant 0 : index
    %262 = vector.load %arg15[%261, %c0_72] : memref<64x96xf32, #tpu.memory_space<vmem>>, vector<8x96xf32>
    %263 = arith.truncf %258 : vector<8x32xf32> to vector<8x32xbf16>
    %cst_73 = arith.constant dense<0.000000e+00> : vector<8x96xf32>
    %264 = tpu.matmul %263, %66, %cst_73 {dimension_numbers = #tpu.dot_dimension_numbers<[1], [0], [0], [1], [0, 0, 1, 1], [], []>} : vector<8x32xbf16>, vector<32x96xbf16>, vector<8x96xf32> -> vector<8x96xf32>
    %265 = vector.extract_strided_slice %262 {offsets = [0, 0], sizes = [8, 64], strides = [1, 1]} : vector<8x96xf32> to vector<8x64xf32>
    %266 = vector.extract_strided_slice %264 {offsets = [0, 0], sizes = [8, 64], strides = [1, 1]} : vector<8x96xf32> to vector<8x64xf32>
    %267 = arith.addf %265, %266 : vector<8x64xf32>
    %268 = arith.negf %267 : vector<8x64xf32>
    %269 = math.exp %268 : vector<8x64xf32>
    %cst_74 = arith.constant 1.000000e+00 : f32
    %270 = vector.broadcast %cst_74 : f32 to vector<8x64xf32>
    %271 = arith.addf %270, %269 : vector<8x64xf32>
    %272 = arith.divf %270, %271 : vector<8x64xf32>
    %273 = vector.extract_strided_slice %272 {offsets = [0, 0], sizes = [8, 32], strides = [1, 1]} : vector<8x64xf32> to vector<8x32xf32>
    %274 = vector.extract_strided_slice %272 {offsets = [0, 32], sizes = [8, 32], strides = [1, 1]} : vector<8x64xf32> to vector<8x32xf32>
    %275 = vector.extract_strided_slice %262 {offsets = [0, 64], sizes = [8, 32], strides = [1, 1]} : vector<8x96xf32> to vector<8x32xf32>
    %276 = vector.extract_strided_slice %264 {offsets = [0, 64], sizes = [8, 32], strides = [1, 1]} : vector<8x96xf32> to vector<8x32xf32>
    %277 = arith.addf %276, %69 : vector<8x32xf32>
    %278 = arith.mulf %273, %277 : vector<8x32xf32>
    %279 = arith.addf %275, %278 : vector<8x32xf32>
    %280 = math.tanh %279 : vector<8x32xf32>
    %cst_75 = arith.constant 1.000000e+00 : f32
    %281 = vector.broadcast %cst_75 : f32 to vector<8x32xf32>
    %282 = arith.subf %281, %274 : vector<8x32xf32>
    %283 = arith.mulf %282, %280 : vector<8x32xf32>
    %284 = arith.mulf %274, %258 : vector<8x32xf32>
    %285 = arith.addf %283, %284 : vector<8x32xf32>
    %c8_i32_76 = arith.constant 8 : i32
    %c0_77 = arith.constant 0 : index
    %c0_78 = arith.constant 0 : index
    %286 = vector.load %arg14[%c0_77, %c0_78] : memref<8x32xf32, #tpu.memory_space<vmem>>, vector<8x32xf32>
    tpu.vector_store %arg14[%c0_77, %c0_78], %285 {strides = array<i32>} : memref<8x32xf32, #tpu.memory_space<vmem>>, vector<8x32xf32>,
    return
  }
  func.func @transform_0(%arg0: i32) -> (i32, i32, i32) {
    %c0_i32 = arith.constant 0 : i32
    %c0_i32_0 = arith.constant 0 : i32
    %c0_i32_1 = arith.constant 0 : i32
    return %arg0, %c0_i32, %c0_i32_0 : i32, i32, i32
  }
  func.func @transform_1(%arg0: i32) -> (i32, i32) {
    %c0_i32 = arith.constant 0 : i32
    %c0_i32_0 = arith.constant 0 : i32
    return %arg0, %c0_i32 : i32, i32
  }
  func.func @transform_2(%arg0: i32) -> (i32, i32) {
    %c0_i32 = arith.constant 0 : i32
    %c0_i32_0 = arith.constant 0 : i32
    return %arg0, %c0_i32 : i32, i32
  }
  func.func @transform_3(%arg0: i32) -> (i32, i32) {
    %c0_i32 = arith.constant 0 : i32
    %c0_i32_0 = arith.constant 0 : i32
    %c0_i32_1 = arith.constant 0 : i32
    return %c0_i32, %c0_i32_0 : i32, i32
  }
  func.func @transform_4(%arg0: i32) -> (i32, i32) {
    %c0_i32 = arith.constant 0 : i32
    %c0_i32_0 = arith.constant 0 : i32
    %c0_i32_1 = arith.constant 0 : i32
    return %c0_i32, %c0_i32_0 : i32, i32
  }
  func.func @transform_5(%arg0: i32) -> (i32, i32) {
    %c0_i32 = arith.constant 0 : i32
    %c0_i32_0 = arith.constant 0 : i32
    %c0_i32_1 = arith.constant 0 : i32
    return %c0_i32, %c0_i32_0 : i32, i32
  }
  func.func @transform_6(%arg0: i32) -> (i32, i32) {
    %c0_i32 = arith.constant 0 : i32
    %c0_i32_0 = arith.constant 0 : i32
    %c0_i32_1 = arith.constant 0 : i32
    return %c0_i32, %c0_i32_0 : i32, i32
  }
  func.func @transform_7(%arg0: i32) -> (i32, i32) {
    %c0_i32 = arith.constant 0 : i32
    %c0_i32_0 = arith.constant 0 : i32
    %c0_i32_1 = arith.constant 0 : i32
    return %c0_i32, %c0_i32_0 : i32, i32
  }
  func.func @transform_8(%arg0: i32) -> (i32, i32) {
    %c0_i32 = arith.constant 0 : i32
    %c0_i32_0 = arith.constant 0 : i32
    %c0_i32_1 = arith.constant 0 : i32
    return %c0_i32, %c0_i32_0 : i32, i32
  }
  func.func @transform_9(%arg0: i32) -> (i32, i32) {
    %c0_i32 = arith.constant 0 : i32
    %c0_i32_0 = arith.constant 0 : i32
    %c0_i32_1 = arith.constant 0 : i32
    return %c0_i32, %c0_i32_0 : i32, i32
  }
  func.func @transform_10(%arg0: i32) -> (i32, i32) {
    %c0_i32 = arith.constant 0 : i32
    %c0_i32_0 = arith.constant 0 : i32
    %c0_i32_1 = arith.constant 0 : i32
    return %c0_i32, %c0_i32_0 : i32, i32
  }
  func.func @transform_11(%arg0: i32) -> (i32, i32) {
    %c0_i32 = arith.constant 0 : i32
    %c0_i32_0 = arith.constant 0 : i32
    %c0_i32_1 = arith.constant 0 : i32
    return %c0_i32, %c0_i32_0 : i32, i32
  }
  func.func @transform_12(%arg0: i32) -> (i32, i32, i32) {
    %c0_i32 = arith.constant 0 : i32
    %c0_i32_0 = arith.constant 0 : i32
    %c0_i32_1 = arith.constant 0 : i32
    return %arg0, %c0_i32, %c0_i32_0 : i32, i32, i32
  }
  func.func @transform_13(%arg0: i32) -> (i32, i32) {
    %c0_i32 = arith.constant 0 : i32
    %c0_i32_0 = arith.constant 0 : i32
    return %arg0, %c0_i32 : i32, i32
  }
}

</mosaic_0001>

<bundles_post_ra>
// kernel: tpu_custom_call.1
= control target key start
LH: loop header
LB: loop body
LE: loop exit
PB: predicated region body
PF: predicated region fallthrough
CT: control target
= control target key end

     0   :  { %19 = vsyncpa [#allocation4], 0  ;;  %vm90_vm0 = vcmask 1040384   ;;  %vm77_vm1 = vcmask 146432   ;;  %vm190_vm2 = vcmask 1041408   ;;  %v2175_v9 = vmov 0   ;;  %s3143_s0 = inlined_call_operand.vmem [shape: f32[1,64,18], index: 0, kind: input, shape index: {}]   ;;  %s3144_s1 = inlined_call_operand.vmem [shape: f32[8,4], index: 1, kind: input, shape index: {}]   ;;  %s3145_s2 = inlined_call_operand.vmem [shape: f32[8,32], index: 2, kind: input, shape index: {}]   ;;  %s3146_s3 = inlined_call_operand.vmem [shape: bf16[18,33], index: 3, kind: input, shape index: {}]   ;;  %s3147_s4 = inlined_call_operand.vmem [shape: f32[1,33], index: 4, kind: input, shape index: {}]   ;;  %s3148_s5 = inlined_call_operand.vmem [shape: bf16[33,160], index: 5, kind: input, shape index: {}]   ;;  %s3149_s6 = inlined_call_operand.vmem [shape: bf16[32,160], index: 6, kind: input, shape index: {}]   ;;  %s3150_s7 = inlined_call_operand.vmem [shape: bf16[4,160], index: 7, kind: input, shape index: {}]   ;;  %s3151_s8 = inlined_call_operand.vmem [shape: f32[1,160], index: 8, kind: input, shape index: {}]   ;;  %s3152_s9 = inlined_call_operand.vmem [shape: bf16[32,96], index: 9, kind: input, shape index: {}]   ;;  %s3153_s10 = inlined_call_operand.vmem [shape: f32[1,32], index: 10, kind: input, shape index: {}]   ;;  %s3154_s11 = inlined_call_operand.vmem [shape: bf16[64,17], index: 11, kind: input, shape index: {}]   ;;  %s3155_s12 = inlined_call_operand.hbm [shape: f32[1,64,128], index: 12, kind: output, shape index: {0}]   ;;  %s3156_s13 = inlined_call_operand.hbm [shape: f32[8,32], index: 13, kind: output, shape index: {1}]  }
   0x1   :  { %v1984_v0 = vld [vmem:[%s3146_s3] sm:$0xff]   ;;  %v1985_v1 = vld [vmem:[%s3146_s3 + $0x8] ss:$0 sps:$4 sm:$0x11]   ;;  %v48_v6 = vld [vmem:[%s3143_s0 + $0x10] sm:$0xff]  ;;  %229 = vmatprep.mubr.bf16.mxu1 %v2175_v9  ;;  %vm186_vm3 = vcmask 31744  }
   0x2   :  { %v46_v2 = vld [vmem:[%s3143_s0] sm:$0xff]  ;;  %1880 = vmatprep.subr.bf16.mxu0 %v1984_v0  ;;  %v47_v3 = vld [vmem:[%s3143_s0 + $0x8] sm:$0xff]  ;;  %v92_v4 = vsel %vm90_vm0, %v1985_v1, 0  ;;  %v49_v7 = vld [vmem:[%s3143_s0 + $0x18] sm:$0xff] }
   0x3   :  { %1881 = vmatpush3.bf16.msra.mxu0 %v1984_v0  ;;  %v54_v5 = vpack.c.bf16 %v47_v3, %v46_v2  ;;  %v50_v8 = vld [vmem:[%s3143_s0 + $0x20] sm:$0xff]  ;;  %v51_v10 = vld [vmem:[%s3143_s0 + $0x28] sm:$0xff]  ;;  %v55_v15 = vpack.c.bf16 %v49_v7, %v48_v6  ;;  %v52_v22 = vld [vmem:[%s3143_s0 + $0x30] sm:$0xff] }
   0x4   :  { %1972 = vmatprep.subr.msk.bf16.mxu0 %vm90_vm0, %v1985_v1  ;;  %v1797_v11 = vld.sshfl [vmem:[%s3150_s7] sm:$0x33 pattern:$0x76325410]  ;;  %v1988_v16 = vld [vmem:[%s3149_s6 + $0x4] ss:$8 sps:$4 sm:$0xff]   ;;  %v56_v17 = vpack.c.bf16 %v51_v10, %v50_v8 }
   0x5   :  { %v174_v12 = vld [vmem:[%s3144_s1] sm:$0xff]  ;;  %1884 = vmatprep.mubr.msk.bf16.mxu0 %vm77_vm1, %v54_v5  ;;  %v185_v13 = vcombine.high %v1797_v11, %v1797_v11  ;;  %v192_v14 = vsel %vm190_vm2, %v1797_v11, 0  ;;  %v53_v23 = vld [vmem:[%s3143_s0 + $0x38] sm:$0xff] }
   0x6   :  { %v175_v18 = vpack.c.bf16 %v174_v12, %v174_v12  ;;  %v1986_v19 = vld [vmem:[%s3149_s6] ss:$8 sps:$4 sm:$0xff]   ;;  %v1994_v21 = vld [vmem:[%s3148_s5 + $0x4] ss:$8 sps:$4 sm:$0xff]   ;;  %v1991_v24 = vld [vmem:[%s3149_s6 + $0x14] ss:$8 sps:$4 sm:$0xff]   ;;  %v57_v29 = vpack.c.bf16 %v53_v23, %v52_v22 }
   0x7   :  { %1883 = vmatpush3.bf16.msra.mxu0 %v92_v4  ;;  %1798 = vmatprep.subr.msk.bf16.mxu1 %vm190_vm2, %v185_v13  ;;  %v1992_v20 = vld [vmem:[%s3148_s5] ss:$8 sps:$4 sm:$0xff]   ;;  %v1989_v25 = vld [vmem:[%s3149_s6 + $0x10] ss:$8 sps:$4 sm:$0xff]   ;;  %v1997_v28 = vld [vmem:[%s3148_s5 + $0x14] ss:$8 sps:$4 sm:$0xff]  }
   0x8   :  { %198 = vmatpush1.bf16.msra.mxu1 %v192_v14  ;;  %363 = vmatprep.subr.bf16.mxu0 %v1994_v21  ;;  %v168_v26 = vld [vmem:[%s3145_s2] sm:$0xff]  ;;  %v1995_v27 = vld [vmem:[%s3148_s5 + $0x10] ss:$8 sps:$4 sm:$0xff]  }
   0x9   :  { %262 = vmatprep.subr.bf16.mxu1 %v1988_v16 }
   0xa   :  { %1885 = vmatmul.mubr.msk.bf16.vlgmr.msra.gmra.mrb[0].mxu0 %vm77_vm1, %v55_v15 }
   0xb   :  { %1888 = vmatprep.mubr.msk.bf16.mxu0 %vm77_vm1, %v56_v17  ;;  %1799 = vmatmul.mubr.msk.bf16.vlgmr.msra.gmra.mrb[0].mxu1 %vm186_vm3, %v175_v18 }
   0xc   :  { %263 = vmatpush1.bf16.msra.mxu1 %v1986_v19  ;;  %364 = vmatpush1.bf16.msra.mxu0 %v1992_v20 }
   0xd   :  { %264 = vmatprep.subr.bf16.mxu1 %v1991_v24  ;;  %294 = vmatprep.mubr.bf16.mxu1 %v2175_v9 }
   0xe   :  { %365 = vmatprep.subr.bf16.mxu0 %v1997_v28 }
   0xf   :  { %20 = vsyncpa [#allocation6], 0  ;;  %v2328_v30 = vpack.c.bf16 %v168_v26, %v168_v26  ;;  %vm258_vm4 = vcmask 261120   ;;  %v167_v31 = vld [vmem:[%s3148_s5 + $0x20] sm:$0x11]  ;;  %v356_v34 = vsel %vm90_vm0, 65535, %v2175_v9  ;;  %v3157_v4 = vlaneseq }
  0x10   :  { %265 = vmatpush1.bf16.msra.mxu1 %v1989_v25  ;;  %366 = vmatpush1.bf16.msra.mxu0 %v1995_v27  ;;  %v1810_v32 = vcombine.high %v167_v31, %v167_v31  ;;  %v1809_v33 = vcombine.low %v167_v31, %v167_v31  ;;  %v1790_v38 = vld [vmem:[%s3147_s4] ss:$0 sm:$0xff]  ;;  %vm342_vm5 = vcmask 269312   ;;  %vm436_vm6 = vcmask 785408   ;;  %s2179_s24 = smov 64   ;;  %s2180_s26 = smov 96  }
  0x11   :  { %v306_v5 = vshrl.u32 %v3157_v4, 7  ;;  %v303_v7 = vld [vmem:[%s3151_s8] sm:$0x3]  ;;  %s2176_s8 = smov 32   ;;  %s2181_s28 = smov 127  }
  0x12   :  { %1889 = vmatmul.mubr.msk.bf16.gmra.mrb[4].mxu0 %vm77_vm1, %v57_v29  ;;  %v361_v35 = vand.u32 %v1810_v32, %v356_v34  ;;  %v358_v36 = vand.u32 %v1809_v33, %v356_v34 }
  0x13   :  { %1804 = vmatmul.mubr.msk.bf16.vlgmr.msra.gmra.mrb[4].mxu1 %vm258_vm4, %v2328_v30  ;;  %395 = vmatprep.mubr.bf16.mxu0 %v2175_v9  ;;  %v307_v6 = vsub.s32 0, %v306_v5  ;;  %v311_v8 = vsub.s32 1, %v306_v5 }
  0x14   :  { %367 = vmatprep.subr.bf16.mxu0 %v361_v35 }
  0x15   :  { %368 = vmatpush1.bf16.msra.mxu0 %v358_v36  ;;  %v308_v10 = vrot.slane %v303_v7, %v307_v6  ;;  %v312_v11 = vrot.slane %v303_v7, %v311_v8 }
  0xdd   :  { %v1886_v37 = vpop.f32.mrb[0].mxu0 }
  0xde   :  { %v128_v39 = vpop.f32.mrb[1].mxu0  ;;  %v231_v40 = vpop.f32.mrb[0].mxu1  ;;  %v137_v43 = vadd.f32 %v1886_v37, %v1790_v38 }
  0xdf   :  { %v1887_v41 = vpop.f32.mrb[2].mxu0  ;;  %v233_v42 = vpop.f32.mrb[1].mxu1  ;;  %v129_v47 = vadd.f32 %v1790_v38, %v128_v39 }
  0xe0   :  { %v140_v44 = vadd.f32 %v1887_v41, %v1790_v38  ;;  %v131_v45 = vpop.f32.mrb[3].mxu0  ;;  %v235_v46 = vpop.f32.mrb[2].mxu1 }
  0xe1   :  { %v132_v48 = vadd.f32 %v1790_v38, %v131_v45  ;;  %v236_v49 = vpop.f32.mrb[3].mxu1 }
  0xe2   :  { %v160_v50 = vpack.c.bf16 %v140_v44, %v137_v43 }
  0xe3   :  { %v159_v51 = vpack.c.bf16 %v132_v48, %v129_v47 }
  0xe5   :  { %1811 = vmatmul.mubr.msk.bf16.vlgmr.msra.gmra.mrb[8].mxu0 %vm342_vm5, %v159_v51  ;;  %v1890_v52 = vpop.f32.mrb[4].mxu0 }
  0xe6   :  { %v153_v53 = vadd.f32 %v1890_v52, %v1790_v38  ;;  %v144_v54 = vpop.f32.mrb[5].mxu0  ;;  %405 = vmatprep.mubr.bf16.mxu0 %v2175_v9  ;;  %v296_v55 = vpop.f32.mrb[4].mxu1 }
  0xe7   :  { %v145_v56 = vadd.f32 %v1790_v38, %v144_v54  ;;  %v1891_v57 = vpop.f32.mrb[6].mxu0  ;;  %v297_v58 = vadd.f32 %v296_v55, %v231_v40  ;;  %v298_v59 = vpop.f32.mrb[5].mxu1 }
  0xe8   :  { %v156_v60 = vadd.f32 %v1891_v57, %v1790_v38  ;;  %v147_v61 = vpop.f32.mrb[7].mxu0  ;;  %v299_v62 = vadd.f32 %v298_v59, %v233_v42  ;;  %v300_v63 = vpop.f32.mrb[6].mxu1 }
  0xe9   :  { %v148_v0 = vadd.f32 %v1790_v38, %v147_v61  ;;  %v301_v1 = vpop.f32.mrb[7].mxu1  ;;  %v2353_v12 = vadd.f32 %v308_v10, %v297_v58 }
  0xea   :  { %v162_v2 = vpack.c.bf16 %v156_v60, %v153_v53  ;;  %v2355_v13 = vadd.f32 %v312_v11, %v299_v62 }
  0xeb   :  { %v161_v3 = vpack.c.bf16 %v148_v0, %v145_v56 }
  0xed   :  { %1812 = vmatmul.mubr.msk.bf16.gmra.mrb[12].mxu0 %vm342_vm5, %v160_v50 }
  0xee   :  { %415 = vmatprep.mubr.bf16.mxu0 %v2175_v9 }
  0xf5   :  { %1813 = vmatmul.mubr.msk.bf16.gmra.mrb[16].mxu0 %vm342_vm5, %v161_v3 }
  0xf6   :  { %425 = vmatprep.mubr.bf16.mxu0 %v2175_v9 }
  0xfd   :  { %1814 = vmatmul.mubr.msk.bf16.gmra.mrb[20].mxu0 %vm342_vm5, %v162_v2 }
 0x1b8   :  { %v397_v14 = vpop.f32.mrb[8].mxu0 }
 0x1b9   :  { %v2358_v9 = vadd.f32 %v397_v14, %v2353_v12  ;;  %v399_v15 = vpop.f32.mrb[9].mxu0 }
 0x1ba   :  { %v2361_v16 = vadd.f32 %v399_v15, %v2355_v13  ;;  %v401_v17 = vpop.f32.mrb[10].mxu0 }
 0x1bb   :  { %437 = vst.msk [vmem:[#allocation2] sm:$0xff] %vm436_vm6, %v2358_v9  ;;  %v2366_v18 = vadd.f32 %v401_v17, %v2353_v12  ;;  %v403_v19 = vpop.f32.mrb[11].mxu0  ;;  %v448_v20 = vmax.f32 %v2358_v9, 0.0  ;;  %v496_v21 = vand.u32 2147483647, %v2358_v9  ;;  %vm464_vm13 = vcmp.ne.f32.partialorder %v2358_v9, %v2358_v9 }
 0x1bc   :  { %v2371_v22 = vadd.f32 %v403_v19, %v2355_v13  ;;  %v497_v24 = vand.u32 2147483647, %v2361_v16  ;;  %v449_v25 = vmax.f32 %v2361_v16, 0.0  ;;  %vm465_vm15 = vcmp.ne.f32.partialorder %v2361_v16, %v2361_v16 }
 0x1bd   :  { %438 = vst.msk [vmem:[#allocation2 + $0x8] sm:$0xff] %vm436_vm6, %v2366_v18  ;;  %754 = vrot.lane.b32.xlu0 %v448_v20, %s2176_s8  ;;  %v450_v23 = vmax.f32 %v2366_v18, 0.0  ;;  %v512_v26 = vsub.f32 0.0, %v496_v21  ;;  %v498_v27 = vand.u32 2147483647, %v2366_v18  ;;  %vm466_vm0 = vcmp.ne.f32.partialorder %v2366_v18, %v2366_v18 }
 0x1be   :  { %v451_v32 = vmax.f32 %v2371_v22, 0.0  ;;  %v513_v35 = vsub.f32 0.0, %v497_v24  ;;  %v499_v36 = vand.u32 2147483647, %v2371_v22  ;;  %vm467_vm1 = vcmp.ne.f32.partialorder %v2371_v22, %v2371_v22 }
 0x1bf   :  { %758 = vrot.lane.b32.xlu1 %v450_v23, %s2176_s8  ;;  %v528_v40 = vmul.f32 1.442695, %v512_v26  ;;  %v514_v41 = vsub.f32 0.0, %v498_v27 }
 0x1c0   :  { %v407_v28 = vpop.f32.mrb[12].mxu0  ;;  %v530_v45 = vmul.f32 1.442695, %v513_v35  ;;  %v515_v46 = vsub.f32 0.0, %v499_v36 }
 0x1c1   :  { %v2386_v29 = vadd.f32 %v407_v28, %v2353_v12  ;;  %v409_v31 = vpop.f32.mrb[13].mxu0  ;;  %756 = vrot.lane.b32.xlu0 %v449_v25, %s2176_s8  ;;  %2006 = vpow2.f32 %v528_v40  ;;  %v532_v48 = vmul.f32 1.442695, %v514_v41 }
 0x1c2   :  { %v2393_v33 = vadd.f32 %v409_v31, %v2355_v13  ;;  %v411_v34 = vpop.f32.mrb[14].mxu0  ;;  %2008 = vpow2.f32 %v530_v45  ;;  %v534_v58 = vmul.f32 1.442695, %v515_v46 }
 0x1c3   :  { %439 = vst.msk [vmem:[#allocation2 + $0x10] sm:$0xff] %vm436_vm6, %v2386_v29  ;;  %v2399_v37 = vadd.f32 %v411_v34, %v2353_v12  ;;  %v413_v38 = vpop.f32.mrb[15].mxu0  ;;  %760 = vrot.lane.b32.xlu1 %v451_v32, %s2176_s8  ;;  %v452_v39 = vmax.f32 %v2386_v29, 0.0  ;;  %v500_v44 = vand.u32 2147483647, %v2386_v29  ;;  %2010 = vpow2.f32 %v532_v48 }
 0x1c4   :  { %v2406_v42 = vadd.f32 %v413_v38, %v2355_v13  ;;  %v453_v43 = vmax.f32 %v2393_v33, 0.0  ;;  %v501_v49 = vand.u32 2147483647, %v2393_v33  ;;  %2012 = vpow2.f32 %v534_v58 }
 0x1c5   :  { %440 = vst.msk [vmem:[#allocation2 + $0x18] sm:$0xff] %vm436_vm6, %v2399_v37  ;;  %762 = vrot.lane.b32.xlu0 %v452_v39, %s2176_s8  ;;  %v454_v47 = vmax.f32 %v2399_v37, 0.0  ;;  %v516_v51 = vsub.f32 0.0, %v500_v44  ;;  %v502_v52 = vand.u32 2147483647, %v2399_v37  ;;  %vm468_vm3 = vcmp.ne.f32.partialorder %v2386_v29, %v2386_v29 }
 0x1c6   :  { %v455_v55 = vmax.f32 %v2406_v42, 0.0  ;;  %v517_v62 = vsub.f32 0.0, %v501_v49  ;;  %v503_v1 = vand.u32 2147483647, %v2406_v42  ;;  %vm469_vm5 = vcmp.ne.f32.partialorder %v2393_v33, %v2393_v33 }
 0x1c7   :  { %764 = vrot.lane.b32.xlu1 %v453_v43, %s2176_s8  ;;  %v536_v63 = vmul.f32 1.442695, %v516_v51  ;;  %v518_v0 = vsub.f32 0.0, %v502_v52 }
 0x1c8   :  { %v417_v50 = vpop.f32.mrb[16].mxu0  ;;  %v538_v3 = vmul.f32 1.442695, %v517_v62  ;;  %v519_v10 = vsub.f32 0.0, %v503_v1 }
 0x1c9   :  { %v2422_v53 = vadd.f32 %v417_v50, %v2353_v12  ;;  %v419_v54 = vpop.f32.mrb[17].mxu0  ;;  %766 = vrot.lane.b32.xlu0 %v454_v47, %s2176_s8  ;;  %2014 = vpow2.f32 %v536_v63  ;;  %v540_v6 = vmul.f32 1.442695, %v518_v0 }
 0x1ca   :  { %v2429_v56 = vadd.f32 %v419_v54, %v2355_v13  ;;  %v421_v57 = vpop.f32.mrb[18].mxu0  ;;  %2016 = vpow2.f32 %v538_v3  ;;  %v542_v26 = vmul.f32 1.442695, %v519_v10 }
 0x1cb   :  { %441 = vst.msk [vmem:[#allocation2 + $0x20] sm:$0xff] %vm436_vm6, %v2422_v53  ;;  %v2434_v59 = vadd.f32 %v421_v57, %v2353_v12  ;;  %v423_v60 = vpop.f32.mrb[19].mxu0  ;;  %768 = vrot.lane.b32.xlu1 %v455_v55, %s2176_s8  ;;  %v456_v61 = vmax.f32 %v2422_v53, 0.0  ;;  %v504_v2 = vand.u32 2147483647, %v2422_v53  ;;  %v2007_v8 = vpop.eup %2006  ;;  %2018 = vpow2.f32 %v540_v6 }
 0x1cc   :  { %v505_v11 = vand.u32 2147483647, %v2429_v56  ;;  %v2449_v15 = vadd.f32 %v423_v60, %v2355_v13  ;;  %v2009_v19 = vpop.eup %2008  ;;  %v560_v21 = vadd.f32 1.0, %v2007_v8  ;;  %v563_v40 = vmul.f32 -0.5, %v2007_v8 }
 0x1cd   :  { %442 = vst.msk [vmem:[#allocation2 + $0x28] sm:$0xff] %vm436_vm6, %v2434_v59  ;;  %770 = vrot.lane.b32.xlu0 %v456_v61, %s2176_s8  ;;  %v520_v14 = vsub.f32 0.0, %v504_v2  ;;  %v2455_v28 = vpop.eup %2010  ;;  %v506_v34 = vand.u32 2147483647, %v2434_v59  ;;  %v569_v35 = vadd.f32 1.0, %v2009_v19  ;;  %v572_v45 = vmul.f32 -0.5, %v2009_v19 }
 0x1ce   :  { %v521_v27 = vsub.f32 0.0, %v505_v11  ;;  %v2458_v36 = vpop.eup %2012  ;;  %2020 = vlog2.f32 %v560_v21  ;;  %v578_v41 = vadd.f32 1.0, %v2455_v28  ;;  %v507_v48 = vand.u32 2147483647, %v2449_v15 }
 0x1cf   :  { %v544_v31 = vmul.f32 1.442695, %v520_v14  ;;  %2022 = vpow2.f32 %v542_v26  ;;  %v522_v46 = vsub.f32 0.0, %v506_v34  ;;  %v566_v49 = vand.u32 2147483647, %v2007_v8 }
 0x1d0   :  { %v427_v5 = vpop.f32.mrb[20].mxu0  ;;  %v546_v38 = vmul.f32 1.442695, %v521_v27  ;;  %v587_v50 = vadd.f32 1.0, %v2458_v36  ;;  %v581_v51 = vmul.f32 -0.5, %v2455_v28  ;;  %v590_v52 = vmul.f32 -0.5, %v2458_v36 }
 0x1d1   :  { %v429_v7 = vpop.f32.mrb[21].mxu0  ;;  %2024 = vpow2.f32 %v544_v31  ;;  %v523_v54 = vsub.f32 0.0, %v507_v48  ;;  %v564_v58 = vadd.f32 1.0, %v563_v40  ;;  %v575_v60 = vand.u32 2147483647, %v2009_v19 }
 0x1d2   :  { %v2451_v17 = vpop.f32.mrb[22].mxu0  ;;  %2026 = vlog2.f32 %v569_v35  ;;  %v584_v0 = vand.u32 2147483647, %v2455_v28  ;;  %v573_v1 = vadd.f32 1.0, %v572_v45  ;;  %v548_v2 = vmul.f32 1.442695, %v522_v46 }
 0x1d3   :  { %v2453_v24 = vpop.f32.mrb[23].mxu0  ;;  %v2461_v44 = vpop.eup %2014  ;;  %2028 = vpow2.f32 %v546_v38  ;;  %v457_v3 = vmax.f32 %v2429_v56, 0.0  ;;  %v550_v10 = vmul.f32 1.442695, %v523_v54  ;;  %v2476_v11 = vadd.f32 %v427_v5, %v2353_v12 }
 0x1d4   :  { %v2467_v57 = vpop.eup %2016  ;;  %2030 = vlog2.f32 %v578_v41  ;;  %v596_v62 = vadd.f32 1.0, %v2461_v44  ;;  %v599_v6 = vmul.f32 -0.5, %v2461_v44  ;;  %vm2478_vm7 = vcmp.lt.f32.partialorder %v566_v49, 0.0004427343 }
 0x1d5   :  { %v2470_v63 = vpop.eup %2018  ;;  %2032 = vlog2.f32 %v587_v50  ;;  %v582_v21 = vadd.f32 1.0, %v581_v51  ;;  %v591_v26 = vadd.f32 1.0, %v590_v52  ;;  %v605_v27 = vadd.f32 1.0, %v2467_v57  ;;  %772 = vrot.lane.b32.xlu1 %v457_v3, %s2176_s8  ;;  %443 = vst.msk [vmem:[#allocation2 + $0x30] sm:$0xff] %vm436_vm6, %v2476_v11 }
 0x1d6   :  { %v2487_v31 = vadd.f32 %v429_v7, %v2355_v13  ;;  %2034 = vlog2.f32 %v596_v62  ;;  %v614_v34 = vadd.f32 1.0, %v2470_v63  ;;  %v508_v5 = vand.u32 2147483647, %v2476_v11  ;;  %v2000_v7 = vld [vmem:[%s3154_s11] sm:$0xff]  }
 0x1d7   :  { %v3158_v35 = vmax.f32 %v2434_v59, 0.0  ;;  %v565_v40 = vmul.f32 %v2007_v8, %v564_v58  ;;  %v2494_v41 = vmul.f32 %v2009_v19, %v573_v1  ;;  %v608_v45 = vmul.f32 -0.5, %v2467_v57  ;;  %1892 = vmatprep.subr.bf16.mxu1 %v2000_v7 }
 0x1d8   :  { %v2021_v38 = vpop.eup %2020  ;;  %2036 = vpow2.f32 %v548_v2  ;;  %vm2499_vm8 = vcmp.lt.f32.partialorder %v575_v60, 0.0004427343  ;;  %v593_v48 = vand.u32 2147483647, %v2458_v36  ;;  %v600_v49 = vadd.f32 1.0, %v599_v6  ;;  %1893 = vmatpush3.bf16.msra.mxu1 %v2000_v7 }
 0x1d9   :  { %v2497_v46 = vpop.eup %2022  ;;  %2038 = vpow2.f32 %v550_v10  ;;  %v524_v50 = vsub.f32 0.0, %v508_v5  ;;  %774 = vrot.lane.b32.xlu0 %v3158_v35, %s2176_s8  ;;  %v2510_v19 = vmul.f32 %v2455_v28, %v582_v21  ;;  %v602_v51 = vand.u32 2147483647, %v2461_v44 }
 0x1da   :  { %2040 = vlog2.f32 %v605_v27  ;;  %v617_v52 = vmul.f32 -0.5, %v2470_v63  ;;  %v562_v58 = vmul.f32 0.6931472, %v2021_v38  ;;  %vm2514_vm9 = vcmp.lt.f32.partialorder %v584_v0, 0.0004427343 }
 0x1db   :  { %v2507_v8 = vpop.eup %2024  ;;  %v2519_v62 = vmul.f32 %v2458_v36, %v591_v26  ;;  %v611_v1 = vand.u32 2147483647, %v2467_v57  ;;  %2042 = vlog2.f32 %v614_v34  ;;  %v609_v28 = vadd.f32 1.0, %v608_v45 }
 0x1dc   :  { %v2027_v54 = vpop.eup %2026  ;;  %v623_v6 = vadd.f32 1.0, %v2497_v46  ;;  %v552_v10 = vmul.f32 1.442695, %v524_v50  ;;  %v509_v21 = vand.u32 2147483647, %v2487_v31  ;;  %v2531_v5 = vmul.f32 %v2461_v44, %v600_v49 }
 0x1dd   :  { %v2522_v2 = vpop.eup %2028  ;;  %vm2526_vm10 = vcmp.lt.f32.partialorder %v593_v48, 0.0004427343  ;;  %v620_v36 = vand.u32 2147483647, %v2470_v63  ;;  %v632_v26 = vadd.f32 1.0, %v2507_v8  ;;  %v2537_v34 = vadd.f32 %v2451_v17, %v2353_v12 }
 0x1de   :  { %v2031_v27 = vpop.eup %2030  ;;  %v571_v38 = vmul.f32 0.6931472, %v2027_v54  ;;  %v618_v45 = vadd.f32 1.0, %v617_v52  ;;  %2044 = vpow2.f32 %v552_v10  ;;  %v525_v50 = vsub.f32 0.0, %v509_v21 }
 0x1df   :  { %v2033_v4 = vpop.eup %2032  ;;  %v568_v48 = vsel %vm2478_vm7, %v565_v40, %v562_v58  ;;  %v641_v35 = vadd.f32 1.0, %v2522_v2  ;;  %444 = vst.msk [vmem:[#allocation2 + $0x38] sm:$0xff] %vm436_vm6, %v2537_v34  ;;  %v510_v44 = vand.u32 2147483647, %v2537_v34  ;;  %v2547_v49 = vadd.f32 %v2453_v24, %v2355_v13 }
 0x1e0   :  { %v580_v12 = vmul.f32 0.6931472, %v2031_v27  ;;  %v2550_v17 = vmul.f32 %v2467_v57, %v609_v28  ;;  %2046 = vlog2.f32 %v623_v6  ;;  %v554_v52 = vmul.f32 1.442695, %v525_v50  ;;  %v2035_v54 = vpop.eup %2034 }
 0x1e1   :  { %vm2552_vm11 = vcmp.lt.f32.partialorder %v602_v51, 0.0004427343  ;;  %2048 = vlog2.f32 %v632_v26  ;;  %v526_v40 = vsub.f32 0.0, %v510_v44  ;;  %v511_v58 = vand.u32 2147483647, %v2547_v49  ;;  %v2002_v51 = vld [vmem:[%s3154_s11 + $0x10] sm:$0xff]  }
 0x1e2   :  { %v459_v10 = vmax.f32 %v2449_v15, 0.0  ;;  %v2558_v21 = vpop.eup %2036  ;;  %v704_v13 = vadd.f32 %v568_v48, %v448_v20  ;;  %v577_v24 = vsel %vm2499_vm8, %v2494_v41, %v571_v38  ;;  %v589_v57 = vmul.f32 0.6931472, %v2033_v4 }
 0x1e3   :  { %vm2565_vm12 = vcmp.lt.f32.partialorder %v611_v1, 0.0004427343  ;;  %2050 = vpow2.f32 %v554_v52  ;;  %v2571_v28 = vpop.eup %2038  ;;  %v2574_v6 = vmul.f32 %v2470_v63, %v618_v45  ;;  %vm2576_vm14 = vcmp.lt.f32.partialorder %v620_v36, 0.0004427343 }
 0x1e4   :  { %2052 = vlog2.f32 %v641_v35  ;;  %v556_v41 = vmul.f32 1.442695, %v526_v40  ;;  %v527_v4 = vsub.f32 0.0, %v511_v58  ;;  %776 = vrot.lane.b32.xlu1 %v459_v10, %s2176_s8  ;;  %v2041_v63 = vpop.eup %2040  ;;  %v586_v1 = vsel %vm2514_vm9, %v2510_v19, %v580_v12 }
 0x1e5   :  { %v626_v35 = vmul.f32 -0.5, %v2497_v46  ;;  %v460_v27 = vmax.f32 %v2476_v11, 0.0  ;;  %v461_v36 = vmax.f32 %v2487_v31, 0.0  ;;  %v2043_v26 = vpop.eup %2042  ;;  %v705_v38 = vadd.f32 %v577_v24, %v449_v25 }
 0x1e6   :  { %v650_v45 = vadd.f32 1.0, %v2558_v21  ;;  %2054 = vpow2.f32 %v556_v41  ;;  %v558_v50 = vmul.f32 1.442695, %v527_v4  ;;  %v595_v60 = vsel %vm2526_vm10, %v2519_v62, %v589_v57 }
 0x1e7   :  { %v598_v19 = vmul.f32 0.6931472, %v2035_v54  ;;  %v629_v48 = vand.u32 2147483647, %v2497_v46  ;;  %v659_v44 = vadd.f32 1.0, %v2571_v28  ;;  %778 = vrot.lane.b32.xlu0 %v460_v27, %s2176_s8  ;;  %v2607_v25 = vadd.f32 %v586_v1, %v450_v23  ;;  %v2001_v23 = vld [vmem:[%s3154_s11 + $0x8] sm:$0xff]  }
 0x1e8   :  { %v607_v12 = vmul.f32 0.6931472, %v2041_v63  ;;  %v635_v52 = vmul.f32 -0.5, %v2507_v8  ;;  %2056 = vpow2.f32 %v558_v50  ;;  %780 = vrot.lane.b32.xlu1 %v461_v36, %s2176_s8  ;;  %v2613_v62 = vpop.eup %2044  ;;  %v616_v0 = vmul.f32 0.6931472, %v2043_v26  ;;  %1894 = vmatprep.subr.bf16.mxu1 %v2001_v23 }
 0x1e9   :  { %v627_v54 = vadd.f32 1.0, %v626_v35  ;;  %v644_v40 = vmul.f32 -0.5, %v2522_v2  ;;  %v462_v58 = vmax.f32 %v2537_v34, 0.0  ;;  %v707_v24 = vadd.f32 %v595_v60, %v451_v32  ;;  %1895 = vmatpush3.bf16.msra.mxu1 %v2001_v23 }
 0x1ea   :  { %2058 = vlog2.f32 %v650_v45  ;;  %v668_v57 = vadd.f32 1.0, %v2613_v62  ;;  %v463_v41 = vmax.f32 %v2547_v49, 0.0  ;;  %v2047_v4 = vpop.eup %2046  ;;  %v604_v7 = vsel %vm2552_vm11, %v2531_v5, %v598_v19  ;;  %1896 = vmatprep.subr.bf16.mxu1 %v2002_v51 }
 0x1eb   :  { %vm2631_vm2 = vcmp.lt.f32.partialorder %v629_v48, 0.0004427343  ;;  %v638_v1 = vand.u32 2147483647, %v2507_v8  ;;  %2060 = vlog2.f32 %v659_v44  ;;  %782 = vrot.lane.b32.xlu0 %v462_v58, %s2176_s8  ;;  %v2049_v32 = vpop.eup %2048  ;;  %v613_v14 = vsel %vm2565_vm12, %v2550_v17, %v607_v12 }
 0x1ec   :  { %v636_v5 = vadd.f32 1.0, %v635_v52  ;;  %2062 = vlog2.f32 %v668_v57  ;;  %784 = vrot.lane.b32.xlu1 %v463_v41, %s2176_s8  ;;  %v720_v35 = vsel %vm464_vm13, %v2358_v9, %v704_v13  ;;  %v622_v26 = vsel %vm2576_vm14, %v2574_v6, %v616_v0 }
 0x1ed   :  { %v2656_v17 = vpop.eup %2050  ;;  %v628_v45 = vmul.f32 %v2497_v46, %v627_v54  ;;  %v645_v50 = vadd.f32 1.0, %v644_v40  ;;  %v721_v9 = vsel %vm465_vm15, %v2361_v16, %v705_v38  ;;  %v708_v60 = vadd.f32 %v604_v7, %v452_v39  ;;  %1897 = vmatpush3.bf16.msra.mxu1 %v2002_v51 }
 0x1ee   :  { %v2053_v13 = vpop.eup %2052  ;;  %v625_v19 = vmul.f32 0.6931472, %v2047_v4  ;;  %v653_v48 = vmul.f32 -0.5, %v2558_v21  ;;  %v677_v44 = vadd.f32 1.0, %v2656_v17  ;;  %v709_v46 = vadd.f32 %v613_v14, %v453_v43  ;;  %v2003_v4 = vld [vmem:[%s3154_s11 + $0x18] sm:$0xff]  }
 0x1ef   :  { %vm2672_vm6 = vcmp.lt.f32.partialorder %v638_v1, 0.0004427343  ;;  %v647_v16 = vand.u32 2147483647, %v2522_v2  ;;  %v662_v20 = vmul.f32 -0.5, %v2571_v28  ;;  %818 = vrot.lane.b32.xlu0 %v720_v35, %s2176_s8  ;;  %v710_v38 = vadd.f32 %v622_v26, %v454_v47  ;;  %1898 = vmatprep.subr.bf16.mxu1 %v2003_v4 }
 0x1f0   :  { %v2679_v39 = vpop.eup %2054  ;;  %v637_v12 = vmul.f32 %v2507_v8, %v636_v5  ;;  %v656_v52 = vand.u32 2147483647, %v2558_v21  ;;  %2064 = vlog2.f32 %v677_v44  ;;  %820 = vrot.lane.b32.xlu1 %v721_v9, %s2176_s8  ;;  %v634_v43 = vmul.f32 0.6931472, %v2049_v32 }
 0x1f1   :  { %v643_v0 = vmul.f32 0.6931472, %v2053_v13  ;;  %v646_v54 = vmul.f32 %v2522_v2, %v645_v50  ;;  %v686_v40 = vadd.f32 1.0, %v2679_v39  ;;  %vm470_vm7 = vcmp.ne.f32.partialorder %v2399_v37, %v2399_v37  ;;  %1899 = vmatpush3.bf16.msra.mxu1 %v2003_v4 }
 0x1f2   :  { %vm471_vm8 = vcmp.ne.f32.partialorder %v2406_v42, %v2406_v42  ;;  %v2692_v47 = vpop.eup %2056  ;;  %v631_v8 = vsel %vm2631_vm2, %v628_v45, %v625_v19  ;;  %v654_v23 = vadd.f32 1.0, %v653_v48  ;;  %v665_v57 = vand.u32 2147483647, %v2571_v28 }
 0x1f3   :  { %v722_v2 = vsel %vm466_vm0, %v2366_v18, %v2607_v25  ;;  %v663_v7 = vadd.f32 1.0, %v662_v20  ;;  %v671_v1 = vmul.f32 -0.5, %v2613_v62  ;;  %2066 = vlog2.f32 %v686_v40 }
 0x1f4   :  { %822 = vrot.lane.b32.xlu0 %v722_v2, %s2176_s8  ;;  %v723_v63 = vsel %vm467_vm1, %v2371_v22, %v707_v24  ;;  %v2059_v32 = vpop.eup %2058  ;;  %vm2711_vm9 = vcmp.lt.f32.partialorder %v647_v16, 0.0004427343  ;;  %v680_v18 = vmul.f32 -0.5, %v2656_v17  ;;  %v695_v25 = vadd.f32 1.0, %v2692_v47 }
 0x1f5   :  { %824 = vrot.lane.b32.xlu1 %v723_v63, %s2176_s8  ;;  %v724_v5 = vsel %vm468_vm3, %v2386_v29, %v708_v60  ;;  %v2061_v35 = vpop.eup %2060  ;;  %v640_v22 = vsel %vm2672_vm6, %v637_v12, %v634_v43  ;;  %v649_v24 = vsel %vm2711_vm9, %v646_v54, %v643_v0  ;;  %vm2726_vm10 = vcmp.lt.f32.partialorder %v656_v52, 0.0004427343 }
 0x1f6   :  { %v725_v26 = vsel %vm469_vm5, %v2393_v33, %v709_v46  ;;  %v2063_v45 = vpop.eup %2062  ;;  %v711_v29 = vadd.f32 %v631_v8, %v455_v55  ;;  %v655_v50 = vmul.f32 %v2558_v21, %v654_v23  ;;  %v674_v9 = vand.u32 2147483647, %v2613_v62 }
 0x1f7   :  { %2068 = vlog2.f32 %v695_v25  ;;  %v652_v13 = vmul.f32 0.6931472, %v2059_v32  ;;  %v664_v60 = vmul.f32 %v2571_v28, %v663_v7  ;;  %vm2739_vm11 = vcmp.lt.f32.partialorder %v665_v57, 0.0004427343 }
 0x1f8   :  { %v672_v48 = vadd.f32 1.0, %v671_v1  ;;  %826 = vrot.lane.b32.xlu0 %v724_v5, %s2176_s8  ;;  %v712_v33 = vadd.f32 %v640_v22, %v456_v61  ;;  %v713_v55 = vadd.f32 %v649_v24, %v457_v3  ;;  %v661_v21 = vmul.f32 0.6931472, %v2061_v35  ;;  %v2827_v24 = vld [vmem:[%s3152_s9 + $0x8] sm:$0xff]  }
 0x1f9   :  { %v681_v44 = vadd.f32 1.0, %v680_v18  ;;  %828 = vrot.lane.b32.xlu1 %v725_v26, %s2176_s8  ;;  %v670_v46 = vmul.f32 0.6931472, %v2063_v45  ;;  %v683_v28 = vand.u32 2147483647, %v2656_v17  ;;  %v689_v6 = vmul.f32 -0.5, %v2679_v39 }
 0x1fa   :  { %v2065_v16 = vpop.eup %2064  ;;  %vm2751_vm12 = vcmp.lt.f32.partialorder %v674_v9, 0.0004427343  ;;  %v698_v12 = vmul.f32 -0.5, %v2692_v47  ;;  %v726_v61 = vsel %vm470_vm7, %v2399_v37, %v710_v38  ;;  %v727_v3 = vsel %vm471_vm8, %v2406_v42, %v711_v29 }
 0x1fb   :  { %v2177_v52 = vmov 0.0   ;;  %v658_v43 = vsel %vm2726_vm10, %v655_v50, %v652_v13  ;;  %v673_v0 = vmul.f32 %v2613_v62, %v672_v48  ;;  %v679_v54 = vmul.f32 0.6931472, %v2065_v16  ;;  %v2782_v62 = vld [vmem:[%s3152_s9] sm:$0xff]  }
 0x1fc   :  { %1908 = vmatprep.subr.bf16.mxu1 %v2177_v52  ;;  %1924 = vmatprep.subr.bf16.mxu0 %v2177_v52  ;;  %vm472_vm13 = vcmp.ne.f32.partialorder %v2422_v53, %v2422_v53  ;;  %v667_v37 = vsel %vm2739_vm11, %v664_v60, %v661_v21  ;;  %v682_v42 = vmul.f32 %v2656_v17, %v681_v44  ;;  %vm2786_vm15 = vcmp.lt.f32.partialorder %v683_v28, 0.0004427343 }
 0x1fd   :  { %830 = vrot.lane.b32.xlu0 %v726_v61, %s2176_s8  ;;  %832 = vrot.lane.b32.xlu1 %v727_v3, %s2176_s8  ;;  %v728_v38 = vsel %vm472_vm13, %v2422_v53, %v712_v33  ;;  %vm473_vm14 = vcmp.ne.f32.partialorder %v2429_v56, %v2429_v56  ;;  %v2067_v40 = vpop.eup %2066  ;;  %v676_v8 = vsel %vm2751_vm12, %v673_v0, %v670_v46  ;;  %v690_v17 = vadd.f32 1.0, %v689_v6 }
 0x1fe   :  { %v729_v57 = vsel %vm473_vm14, %v2429_v56, %v713_v55  ;;  %v3187_v53 = vmax.f32 %v2434_v59, 0.0  ;;  %v685_v4 = vsel %vm2786_vm15, %v682_v42, %v679_v54  ;;  %v692_v7 = vand.u32 2147483647, %v2679_v39  ;;  %1925 = vmatpush3.bf16.msra.mxu0 %v2782_v62 }
 0x1ff   :  { %v699_v1 = vadd.f32 1.0, %v698_v12  ;;  %v715_v63 = vadd.f32 %v667_v37, %v459_v10  ;;  %v688_v32 = vmul.f32 0.6931472, %v2067_v40  ;;  %v701_v14 = vand.u32 2147483647, %v2692_v47  ;;  %1926 = vmatprep.subr.bf16.mxu0 %v2177_v52 }
 0x200   :  { %v714_v2 = vadd.f32 %v658_v43, %v3187_v53  ;;  %v716_v18 = vadd.f32 %v676_v8, %v460_v27  ;;  %vm474_vm0 = vcmp.ne.f32.partialorder %v2434_v59, %v2434_v59  ;;  %v717_v25 = vadd.f32 %v685_v4, %v461_v36 }
 0x201   :  { %834 = vrot.lane.b32.xlu0 %v728_v38, %s2176_s8  ;;  %v2069_v56 = vpop.eup %2068  ;;  %836 = vrot.lane.b32.xlu1 %v729_v57, %s2176_s8  ;;  %v691_v10 = vmul.f32 %v2679_v39, %v690_v17  ;;  %vm475_vm1 = vcmp.ne.f32.partialorder %v2449_v15, %v2449_v15  ;;  %vm2812_vm2 = vcmp.lt.f32.partialorder %v692_v7, 0.0004427343  ;;  %v700_v27 = vmul.f32 %v2692_v47, %v699_v1 }
 0x202   :  { %v697_v5 = vmul.f32 0.6931472, %v2069_v56  ;;  %v730_v22 = vsel %vm474_vm0, %v2434_v59, %v714_v2  ;;  %vm476_vm3 = vcmp.ne.f32.partialorder %v2476_v11, %v2476_v11  ;;  %vm702_vm5 = vcmp.lt.f32.partialorder %v701_v14, 0.0004427343  ;;  %1927 = vmatpush3.bf16.msra.mxu0 %v2827_v24 }
 0x203   :  { %v694_v36 = vsel %vm2812_vm2, %v691_v10, %v688_v32  ;;  %v731_v39 = vsel %vm475_vm1, %v2449_v15, %v715_v63  ;;  %v732_v59 = vsel %vm476_vm3, %v2476_v11, %v716_v18  ;;  %vm477_vm6 = vcmp.ne.f32.partialorder %v2487_v31, %v2487_v31  ;;  %1940 = vmatprep.subr.bf16.mxu0 %v2177_v52 }
 0x204   :  { %v703_v51 = vsel %vm702_vm5, %v700_v27, %v697_v5  ;;  %vm2178_vm7 = vmmov 0   ;;  %v733_v47 = vsel %vm477_vm6, %v2487_v31, %v717_v25  ;;  %v718_v15 = vadd.f32 %v694_v36, %v462_v58  ;;  %v1823_v58 = vld [vmem:[%s3153_s10] ss:$0 sm:$0xff] }
 0x205   :  { %838 = vrot.lane.b32.xlu0 %v730_v22, %s2176_s8  ;;  %840 = vrot.lane.b32.xlu1 %v731_v39, %s2176_s8  ;;  %v719_v26 = vadd.f32 %v703_v51, %v463_v41  ;;  %vm478_vm8 = vcmp.ne.f32.partialorder %v2537_v34, %v2537_v34  ;;  %vm479_vm9 = vcmp.ne.f32.partialorder %v2547_v49, %v2547_v49  ;;  %v3190_v28 = vlaneseq }
 0x206   :  { %1928 = vmatprep.mubr.msk.bf16.mxu0 %vm2178_vm7, %v2177_v52  ;;  %v734_v11 = vsel %vm478_vm8, %v2537_v34, %v718_v15  ;;  %vm910_vm11 = vcmask 523264   ;;  %vm1100_vm12 = vcmask 392192   ;;  %vm1109_vm13 = vcmask 400384  }
 0x207   :  { %v735_v31 = vsel %vm479_vm9, %v2547_v49, %v719_v26  ;;  %v446_v6 = vand.u32 127, %v3190_v28 }
 0x209   :  { %842 = vrot.lane.b32.xlu0 %v732_v59, %s2176_s8  ;;  %844 = vrot.lane.b32.xlu1 %v733_v47, %s2176_s8  ;;  %vm447_vm10 = vcmp.lt.s32.totalorder %v446_v6, 32 }
 0x20d   :  { %846 = vrot.lane.b32.xlu0 %v734_v11, %s2176_s8  ;;  %848 = vrot.lane.b32.xlu1 %v735_v31, %s2176_s8 }
 0x211   :  { %1196 = vrot.lane.b32.xlu0 %v1823_v58, %s2179_s24 }
 0x22f   :  { %v755_v41 = vpop.permute.xlu0 %754 }
 0x231   :  { %v759_v45 = vpop.permute.xlu1 %758 }
 0x233   :  { %v757_v29 = vpop.permute.xlu0 %756 }
 0x234   :  { %v786_v43 = vsel %vm258_vm4, %v755_v41, %v757_v29 }
 0x235   :  { %v761_v34 = vpop.permute.xlu1 %760 }
 0x236   :  { %v787_v0 = vsel %vm258_vm4, %v759_v45, %v761_v34 }
 0x237   :  { %v763_v50 = vpop.permute.xlu0 %762 }
 0x239   :  { %v765_v9 = vpop.permute.xlu1 %764 }
 0x23a   :  { %v788_v53 = vsel %vm258_vm4, %v763_v50, %v765_v9 }
 0x23b   :  { %v767_v13 = vpop.permute.xlu0 %766 }
 0x23d   :  { %v769_v60 = vpop.permute.xlu1 %768 }
 0x23e   :  { %v789_v2 = vsel %vm258_vm4, %v767_v13, %v769_v60 }
 0x23f   :  { %v771_v19 = vpop.permute.xlu0 %770 }
 0x247   :  { %v773_v48 = vpop.permute.xlu1 %772 }
 0x248   :  { %v790_v10 = vsel %vm258_vm4, %v771_v19, %v773_v48 }
 0x24b   :  { %v775_v49 = vpop.permute.xlu0 %774 }
 0x256   :  { %v777_v33 = vpop.permute.xlu1 %776 }
 0x257   :  { %v791_v5 = vsel %vm258_vm4, %v775_v49, %v777_v33 }
 0x259   :  { %v779_v55 = vpop.permute.xlu0 %778 }
 0x25a   :  { %v781_v21 = vpop.permute.xlu1 %780 }
 0x25b   :  { %v792_v26 = vsel %vm258_vm4, %v779_v55, %v781_v21 }
 0x25d   :  { %v783_v44 = vpop.permute.xlu0 %782 }
 0x25e   :  { %v785_v46 = vpop.permute.xlu1 %784 }
 0x25f   :  { %v793_v11 = vsel %vm258_vm4, %v783_v44, %v785_v46  ;;  %v1136_v46 = vld [vmem:[#allocation2] sm:$0xff] }
 0x261   :  { %v819_v16 = vpop.permute.xlu0 %818 }
 0x262   :  { %v821_v20 = vpop.permute.xlu1 %820 }
 0x263   :  { %v850_v12 = vsel %vm258_vm4, %v819_v16, %v821_v20 }
 0x264   :  { %v2862_v37 = vsel %vm447_vm10, %v786_v43, %v850_v12  ;;  %v2118_v43 = vld [vmem:[%s3145_s2] sm:$0xff] }
 0x266   :  { %v823_v61 = vpop.permute.xlu0 %822 }
 0x267   :  { %v825_v3 = vpop.permute.xlu1 %824 }
 0x268   :  { %v851_v54 = vsel %vm258_vm4, %v823_v61, %v825_v3 }
 0x269   :  { %v2865_v42 = vsel %vm447_vm10, %v787_v0, %v851_v54 }
 0x26a   :  { %v874_v38 = vpack.c.bf16 %v2865_v42, %v2862_v37  ;;  %v827_v40 = vpop.permute.xlu0 %826 }
 0x26b   :  { %v829_v8 = vpop.permute.xlu1 %828 }
 0x26c   :  { %1900 = vmatprep.mubr.msk.bf16.mxu1 %vm910_vm11, %v874_v38  ;;  %v852_v23 = vsel %vm258_vm4, %v827_v40, %v829_v8 }
 0x26d   :  { %v2875_v7 = vsel %vm447_vm10, %v788_v53, %v852_v23 }
 0x26f   :  { %v831_v17 = vpop.permute.xlu0 %830  ;;  %v833_v57 = vpop.permute.xlu1 %832 }
 0x270   :  { %v853_v4 = vsel %vm258_vm4, %v831_v17, %v833_v57 }
 0x271   :  { %v2878_v1 = vsel %vm447_vm10, %v789_v2, %v853_v4 }
 0x272   :  { %v875_v63 = vpack.c.bf16 %v2878_v1, %v2875_v7 }
 0x273   :  { %v835_v32 = vpop.permute.xlu0 %834  ;;  %v837_v14 = vpop.permute.xlu1 %836 }
 0x274   :  { %1901 = vmatmul.mubr.msk.bf16.vlgmr.msra.gmra.mrb[8].mxu1 %vm910_vm11, %v875_v63  ;;  %v854_v56 = vsel %vm258_vm4, %v835_v32, %v837_v14 }
 0x275   :  { %1909 = vmatpush3.bf16.msra.mxu1 %v2782_v62  ;;  %v2890_v27 = vsel %vm447_vm10, %v790_v10, %v854_v56 }
 0x276   :  { %1910 = vmatprep.subr.bf16.mxu1 %v2177_v52 }
 0x277   :  { %v839_v18 = vpop.permute.xlu0 %838  ;;  %v841_v25 = vpop.permute.xlu1 %840 }
 0x278   :  { %v855_v35 = vsel %vm258_vm4, %v839_v18, %v841_v25  ;;  %v1224_v25 = vld [vmem:[#allocation2 + $0x8] sm:$0xff] }
 0x279   :  { %v2893_v22 = vsel %vm447_vm10, %v791_v5, %v855_v35  ;;  %1911 = vmatpush3.bf16.msra.mxu1 %v2827_v24 }
 0x27a   :  { %v876_v36 = vpack.c.bf16 %v2893_v22, %v2890_v27  ;;  %1916 = vmatprep.subr.bf16.mxu1 %v2177_v52 }
 0x27b   :  { %v843_v39 = vpop.permute.xlu0 %842  ;;  %v845_v51 = vpop.permute.xlu1 %844 }
 0x27c   :  { %1904 = vmatprep.mubr.msk.bf16.mxu1 %vm910_vm11, %v876_v36  ;;  %v856_v59 = vsel %vm258_vm4, %v843_v39, %v845_v51 }
 0x27d   :  { %v2905_v58 = vsel %vm447_vm10, %v792_v26, %v856_v59 }
 0x27f   :  { %v847_v47 = vpop.permute.xlu0 %846  ;;  %v849_v15 = vpop.permute.xlu1 %848 }
 0x280   :  { %v857_v31 = vsel %vm258_vm4, %v847_v47, %v849_v15 }
 0x281   :  { %v2908_v41 = vsel %vm447_vm10, %v793_v11, %v857_v31 }
 0x282   :  { %v877_v45 = vpack.c.bf16 %v2908_v41, %v2905_v58 }
 0x283   :  { %v2939_v48 = vpop.permute.xlu0 %1196 }
 0x284   :  { %1905 = vmatmul.mubr.msk.bf16.gmra.mrb[12].mxu1 %vm910_vm11, %v877_v45 }
 0x285   :  { %1912 = vmatprep.mubr.msk.bf16.mxu1 %vm2178_vm7, %v2177_v52 }
 0x28c   :  { %1913 = vmatmul.mubr.msk.bf16.vlgmr.msra.gmra.mrb[16].mxu1 %vm258_vm4, %v2328_v30 }
 0x28d   :  { %1917 = vmatpush3.bf16.msra.mxu1 %v2782_v62  ;;  %1920 = vmatprep.mubr.msk.bf16.mxu1 %vm2178_vm7, %v2177_v52 }
 0x28e   :  { %1918 = vmatprep.subr.bf16.mxu1 %v2177_v52 }
 0x291   :  { %1919 = vmatpush3.bf16.msra.mxu1 %v2827_v24 }
 0x292   :  { %1932 = vmatprep.subr.bf16.mxu1 %v2177_v52 }
 0x347   :  { %v2923_v29 = vpop.f32.mrb[8].mxu1 }
 0x348   :  { %v2925_v34 = vpop.f32.mrb[9].mxu1 }
 0x349   :  { %v2927_v50 = vpop.f32.mrb[10].mxu1 }
 0x34a   :  { %v2929_v9 = vpop.f32.mrb[11].mxu1 }
 0x357   :  { %v2931_v30 = vpop.f32.mrb[12].mxu1 }
 0x358   :  { %v2933_v13 = vpop.f32.mrb[13].mxu1 }
 0x359   :  { %v2935_v60 = vpop.f32.mrb[14].mxu1 }
 0x35a   :  { %v2937_v19 = vpop.f32.mrb[15].mxu1 }
 0x35f   :  { %v1183_v49 = vpop.f32.mrb[16].mxu1 }
 0x360   :  { %v1914_v33 = vpop.f32.mrb[17].mxu1  ;;  %v1199_v55 = vadd.f32 %v2939_v48, %v1183_v49  ;;  %v1189_v28 = vadd.f32 %v1183_v49, %v1136_v46 }
 0x361   :  { %v1186_v21 = vpop.f32.mrb[18].mxu1 }
 0x362   :  { %v1915_v44 = vpop.f32.mrb[19].mxu1  ;;  %1201 = vrot.lane.b32.xlu1 %v1199_v55, %s2179_s24  ;;  %v1827_v6 = vmul.f32 -1.442695, %v1189_v28 }
 0x364   :  { %2070 = vpow2.f32 %v1827_v6 }
 0x36e   :  { %v2071_v16 = vpop.eup %2070 }
 0x36f   :  { %v1193_v20 = vadd.f32 1.0, %v2071_v16 }
 0x371   :  { %2072 = vrcp.f32 %v1193_v20  ;;  %v1300_v20 = vld [vmem:[#allocation2 + $0x10] sm:$0xff] }
 0x37b   :  { %v2073_v12 = vpop.eup %2072 }
 0x37c   :  { %v1211_v8 = vsub.f32 1.0, %v2073_v12 }
 0x3d4   :  { %v1202_v61 = vpop.permute.xlu1 %1201 }
 0x3d5   :  { %v1204_v3 = vmul.f32 %v2073_v12, %v1202_v61 }
 0x3d7   :  { %1206 = vrot.lane.b32.xlu0 %v1204_v3, %s2179_s24 }
 0x3db   :  { %1218 = vrot.lane.b32.xlu0 %v2118_v43, %s2176_s8 }
 0x449   :  { %v1207_v0 = vpop.permute.xlu0 %1206 }
 0x44a   :  { %v1209_v54 = vadd.f32 %v1207_v0, %v1136_v46 }
 0x44c   :  { %2074 = vtanh.f32 %v1209_v54 }
 0x44d   :  { %v1219_v40 = vpop.permute.xlu0 %1218 }
 0x44e   :  { %v1221_v17 = vmul.f32 %v2073_v12, %v1219_v40 }
 0x456   :  { %v2075_v38 = vpop.eup %2074 }
 0x457   :  { %1213 = vrot.lane.b32.xlu1 %v2075_v38, %s2180_s26 }
 0x4c9   :  { %v1214_v23 = vpop.permute.xlu1 %1213 }
 0x4ca   :  { %v1216_v57 = vmul.f32 %v1214_v23, %v1211_v8 }
 0x4cc   :  { %v1222_v53 = vadd.f32 %v1221_v17, %v1216_v57 }
 0x4ce   :  { %v1225_v2 = vpack.c.bf16 %v1222_v53, %v1222_v53 }
 0x4d0   :  { %1227 = vrot.lane.b32.xlu1 %v1225_v2, %s2180_s26 }
 0x542   :  { %v1228_v4 = vpop.permute.xlu1 %1227 }
 0x543   :  { %1921 = vmatmul.mubr.msk.bf16.vlgmr.msra.gmra.mrb[20].mxu1 %vm258_vm4, %v1228_v4 }
 0x544   :  { %1933 = vmatpush3.bf16.msra.mxu1 %v2782_v62  ;;  %1936 = vmatprep.mubr.msk.bf16.mxu1 %vm2178_vm7, %v2177_v52 }
 0x545   :  { %1934 = vmatprep.subr.bf16.mxu1 %v2177_v52 }
 0x548   :  { %1935 = vmatpush3.bf16.msra.mxu1 %v2827_v24 }
 0x549   :  { %1948 = vmatprep.subr.bf16.mxu1 %v2177_v52 }
 0x616   :  { %v1266_v63 = vpop.f32.mrb[20].mxu1 }
 0x617   :  { %v1279_v32 = vadd.f32 %v1266_v63, %v2939_v48  ;;  %v1922_v14 = vpop.f32.mrb[21].mxu1  ;;  %v1272_v10 = vadd.f32 %v1266_v63, %v1224_v25 }
 0x618   :  { %v1269_v56 = vpop.f32.mrb[22].mxu1 }
 0x619   :  { %1281 = vrot.lane.b32.xlu0 %v1279_v32, %s2179_s24  ;;  %v1923_v18 = vpop.f32.mrb[23].mxu1  ;;  %v1829_v5 = vmul.f32 -1.442695, %v1272_v10 }
 0x61b   :  { %2076 = vpow2.f32 %v1829_v5  ;;  %v1376_v5 = vld [vmem:[#allocation2 + $0x18] sm:$0xff] }
 0x625   :  { %v2077_v35 = vpop.eup %2076 }
 0x626   :  { %v1276_v36 = vadd.f32 1.0, %v2077_v35 }
 0x628   :  { %2078 = vrcp.f32 %v1276_v36 }
 0x632   :  { %v2079_v39 = vpop.eup %2078 }
 0x633   :  { %v1291_v11 = vsub.f32 1.0, %v2079_v39  ;;  %v1297_v45 = vmul.f32 %v2079_v39, %v1222_v53 }
 0x68b   :  { %v1282_v51 = vpop.permute.xlu0 %1281 }
 0x68c   :  { %v1284_v59 = vmul.f32 %v2079_v39, %v1282_v51 }
 0x68e   :  { %1286 = vrot.lane.b32.xlu1 %v1284_v59, %s2179_s24 }
 0x700   :  { %v1287_v47 = vpop.permute.xlu1 %1286 }
 0x701   :  { %v1289_v15 = vadd.f32 %v1287_v47, %v1224_v25 }
 0x703   :  { %2080 = vtanh.f32 %v1289_v15 }
 0x70d   :  { %v2081_v26 = vpop.eup %2080 }
 0x70e   :  { %1293 = vrot.lane.b32.xlu0 %v2081_v26, %s2180_s26 }
 0x780   :  { %v1294_v31 = vpop.permute.xlu0 %1293 }
 0x781   :  { %v1296_v49 = vmul.f32 %v1294_v31, %v1291_v11 }
 0x783   :  { %v1298_v33 = vadd.f32 %v1297_v45, %v1296_v49 }
 0x785   :  { %v1301_v55 = vpack.c.bf16 %v1298_v33, %v1298_v33 }
 0x787   :  { %1303 = vrot.lane.b32.xlu1 %v1301_v55, %s2180_s26 }
 0x7f9   :  { %v1304_v21 = vpop.permute.xlu1 %1303 }
 0x7fa   :  { %1929 = vmatmul.mubr.msk.bf16.vlgmr.msra.gmra.mrb[24].mxu0 %vm258_vm4, %v1304_v21 }
 0x7fb   :  { %1941 = vmatpush3.bf16.msra.mxu0 %v2782_v62  ;;  %1944 = vmatprep.mubr.msk.bf16.mxu0 %vm2178_vm7, %v2177_v52 }
 0x7fc   :  { %1942 = vmatprep.subr.bf16.mxu0 %v2177_v52 }
 0x7ff   :  { %1943 = vmatpush3.bf16.msra.mxu0 %v2827_v24 }
 0x800   :  { %1956 = vmatprep.subr.bf16.mxu0 %v2177_v52 }
 0x8cd   :  { %v1342_v44 = vpop.f32.mrb[24].mxu0 }
 0x8ce   :  { %v1355_v46 = vadd.f32 %v1342_v44, %v2939_v48  ;;  %v1930_v28 = vpop.f32.mrb[25].mxu0  ;;  %v1348_v12 = vadd.f32 %v1342_v44, %v1300_v20 }
 0x8cf   :  { %v1345_v6 = vpop.f32.mrb[26].mxu0 }
 0x8d0   :  { %1357 = vrot.lane.b32.xlu0 %v1355_v46, %s2179_s24  ;;  %v1931_v16 = vpop.f32.mrb[27].mxu0  ;;  %v1831_v61 = vmul.f32 -1.442695, %v1348_v12 }
 0x8d2   :  { %2082 = vpow2.f32 %v1831_v61  ;;  %v1452_v61 = vld [vmem:[#allocation2 + $0x20] sm:$0xff] }
 0x8dc   :  { %v2083_v3 = vpop.eup %2082 }
 0x8dd   :  { %v1352_v43 = vadd.f32 1.0, %v2083_v3 }
 0x8df   :  { %2084 = vrcp.f32 %v1352_v43 }
 0x8e9   :  { %v2085_v0 = vpop.eup %2084 }
 0x8ea   :  { %v1367_v17 = vsub.f32 1.0, %v2085_v0  ;;  %v1373_v53 = vmul.f32 %v2085_v0, %v1298_v33 }
 0x942   :  { %v1358_v54 = vpop.permute.xlu0 %1357 }
 0x943   :  { %v1360_v38 = vmul.f32 %v2085_v0, %v1358_v54 }
 0x945   :  { %1362 = vrot.lane.b32.xlu1 %v1360_v38, %s2179_s24 }
 0x9b7   :  { %v1363_v40 = vpop.permute.xlu1 %1362 }
 0x9b8   :  { %v1365_v8 = vadd.f32 %v1363_v40, %v1300_v20 }
 0x9ba   :  { %2086 = vtanh.f32 %v1365_v8 }
 0x9c4   :  { %v2087_v23 = vpop.eup %2086 }
 0x9c5   :  { %1369 = vrot.lane.b32.xlu0 %v2087_v23, %s2180_s26 }
 0xa37   :  { %v1370_v57 = vpop.permute.xlu0 %1369 }
 0xa38   :  { %v1372_v2 = vmul.f32 %v1370_v57, %v1367_v17 }
 0xa3a   :  { %v1374_v4 = vadd.f32 %v1373_v53, %v1372_v2 }
 0xa3c   :  { %v1377_v63 = vpack.c.bf16 %v1374_v4, %v1374_v4 }
 0xa3e   :  { %1379 = vrot.lane.b32.xlu1 %v1377_v63, %s2180_s26 }
 0xab0   :  { %v1380_v32 = vpop.permute.xlu1 %1379 }
 0xab1   :  { %1937 = vmatmul.mubr.msk.bf16.vlgmr.msra.gmra.mrb[24].mxu1 %vm258_vm4, %v1380_v32 }
 0xab2   :  { %1949 = vmatpush3.bf16.msra.mxu1 %v2782_v62  ;;  %1952 = vmatprep.mubr.msk.bf16.mxu1 %vm2178_vm7, %v2177_v52 }
 0xab3   :  { %1950 = vmatprep.subr.bf16.mxu1 %v2177_v52 }
 0xab6   :  { %1951 = vmatpush3.bf16.msra.mxu1 %v2827_v24 }
 0xab7   :  { %1964 = vmatprep.subr.bf16.mxu1 %v2177_v52 }
 0xb84   :  { %v1418_v14 = vpop.f32.mrb[24].mxu1 }
 0xb85   :  { %v1431_v56 = vadd.f32 %v1418_v14, %v2939_v48  ;;  %v1938_v18 = vpop.f32.mrb[25].mxu1  ;;  %v1424_v35 = vadd.f32 %v1418_v14, %v1376_v5 }
 0xb86   :  { %v1421_v25 = vpop.f32.mrb[26].mxu1 }
 0xb87   :  { %1433 = vrot.lane.b32.xlu0 %v1431_v56, %s2179_s24  ;;  %v1939_v10 = vpop.f32.mrb[27].mxu1  ;;  %v1833_v36 = vmul.f32 -1.442695, %v1424_v35 }
 0xb89   :  { %2088 = vpow2.f32 %v1833_v36  ;;  %v1528_v36 = vld [vmem:[#allocation2 + $0x28] sm:$0xff] }
 0xb93   :  { %v2089_v39 = vpop.eup %2088 }
 0xb94   :  { %v1428_v51 = vadd.f32 1.0, %v2089_v39 }
 0xb96   :  { %2090 = vrcp.f32 %v1428_v51 }
 0xba0   :  { %v2091_v59 = vpop.eup %2090 }
 0xba1   :  { %v1443_v45 = vsub.f32 1.0, %v2091_v59  ;;  %v1449_v33 = vmul.f32 %v2091_v59, %v1374_v4 }
 0xbf9   :  { %v1434_v47 = vpop.permute.xlu0 %1433 }
 0xbfa   :  { %v1436_v15 = vmul.f32 %v2091_v59, %v1434_v47 }
 0xbfc   :  { %1438 = vrot.lane.b32.xlu1 %v1436_v15, %s2179_s24 }
 0xc6e   :  { %v1439_v26 = vpop.permute.xlu1 %1438 }
 0xc6f   :  { %v1441_v11 = vadd.f32 %v1439_v26, %v1376_v5 }
 0xc71   :  { %2092 = vtanh.f32 %v1441_v11 }
 0xc7b   :  { %v2093_v31 = vpop.eup %2092 }
 0xc7c   :  { %1445 = vrot.lane.b32.xlu0 %v2093_v31, %s2180_s26 }
 0xcee   :  { %v1446_v49 = vpop.permute.xlu0 %1445 }
 0xcef   :  { %v1448_v55 = vmul.f32 %v1446_v49, %v1443_v45 }
 0xcf1   :  { %v1450_v21 = vadd.f32 %v1449_v33, %v1448_v55 }
 0xcf3   :  { %v1453_v44 = vpack.c.bf16 %v1450_v21, %v1450_v21 }
 0xcf5   :  { %1455 = vrot.lane.b32.xlu1 %v1453_v44, %s2180_s26 }
 0xd67   :  { %v1456_v46 = vpop.permute.xlu1 %1455 }
 0xd68   :  { %1945 = vmatmul.mubr.msk.bf16.vlgmr.msra.gmra.mrb[28].mxu0 %vm258_vm4, %v1456_v46 }
 0xd69   :  { %1957 = vmatpush3.bf16.msra.mxu0 %v2782_v62  ;;  %1960 = vmatprep.mubr.msk.bf16.mxu0 %vm2178_vm7, %v2177_v52 }
 0xd6a   :  { %1958 = vmatprep.subr.bf16.mxu0 %v2177_v52 }
 0xd6d   :  { %1959 = vmatpush3.bf16.msra.mxu0 %v2827_v24 }
 0xe3b   :  { %v1494_v28 = vpop.f32.mrb[28].mxu0 }
 0xe3c   :  { %v1507_v6 = vadd.f32 %v1494_v28, %v2939_v48  ;;  %v1946_v16 = vpop.f32.mrb[29].mxu0  ;;  %v1500_v3 = vadd.f32 %v1494_v28, %v1452_v61 }
 0xe3d   :  { %v1497_v20 = vpop.f32.mrb[30].mxu0 }
 0xe3e   :  { %1509 = vrot.lane.b32.xlu0 %v1507_v6, %s2179_s24  ;;  %v1947_v12 = vpop.f32.mrb[31].mxu0  ;;  %v1835_v43 = vmul.f32 -1.442695, %v1500_v3 }
 0xe3f   :  { %v1604_v12 = vld [vmem:[#allocation2 + $0x30] sm:$0xff] }
 0xe40   :  { %2094 = vpow2.f32 %v1835_v43 }
 0xe4a   :  { %v2095_v0 = vpop.eup %2094 }
 0xe4b   :  { %v1504_v54 = vadd.f32 1.0, %v2095_v0 }
 0xe4d   :  { %2096 = vrcp.f32 %v1504_v54 }
 0xe57   :  { %v2097_v38 = vpop.eup %2096 }
 0xe58   :  { %v1519_v53 = vsub.f32 1.0, %v2097_v38  ;;  %v1525_v4 = vmul.f32 %v2097_v38, %v1450_v21 }
 0xeb0   :  { %v1510_v40 = vpop.permute.xlu0 %1509 }
 0xeb1   :  { %v1512_v8 = vmul.f32 %v2097_v38, %v1510_v40 }
 0xeb3   :  { %1514 = vrot.lane.b32.xlu1 %v1512_v8, %s2179_s24 }
 0xf25   :  { %v1515_v23 = vpop.permute.xlu1 %1514 }
 0xf26   :  { %v1517_v17 = vadd.f32 %v1515_v23, %v1452_v61 }
 0xf28   :  { %2098 = vtanh.f32 %v1517_v17 }
 0xf32   :  { %v2099_v57 = vpop.eup %2098 }
 0xf33   :  { %1521 = vrot.lane.b32.xlu0 %v2099_v57, %s2180_s26 }
 0xfa5   :  { %v1522_v2 = vpop.permute.xlu0 %1521 }
 0xfa6   :  { %v1524_v63 = vmul.f32 %v1522_v2, %v1519_v53 }
 0xfa8   :  { %v1526_v32 = vadd.f32 %v1525_v4, %v1524_v63 }
 0xfaa   :  { %v1529_v14 = vpack.c.bf16 %v1526_v32, %v1526_v32 }
 0xfac   :  { %1531 = vrot.lane.b32.xlu1 %v1529_v14, %s2180_s26 }
0x101e   :  { %v1532_v56 = vpop.permute.xlu1 %1531 }
0x101f   :  { %1953 = vmatmul.mubr.msk.bf16.vlgmr.msra.gmra.mrb[28].mxu1 %vm258_vm4, %v1532_v56 }
0x1020   :  { %1965 = vmatpush3.bf16.msra.mxu1 %v2782_v62  ;;  %1968 = vmatprep.mubr.msk.bf16.mxu1 %vm2178_vm7, %v2177_v52 }
0x1021   :  { %1966 = vmatprep.subr.bf16.mxu1 %v2177_v52 }
0x1024   :  { %1967 = vmatpush3.bf16.msra.mxu1 %v2827_v24 }
0x10f2   :  { %v1570_v18 = vpop.f32.mrb[28].mxu1 }
0x10f3   :  { %v1583_v25 = vadd.f32 %v1570_v18, %v2939_v48  ;;  %v1954_v10 = vpop.f32.mrb[29].mxu1  ;;  %v1576_v39 = vadd.f32 %v1570_v18, %v1528_v36 }
0x10f4   :  { %v1573_v5 = vpop.f32.mrb[30].mxu1 }
0x10f5   :  { %1585 = vrot.lane.b32.xlu0 %v1583_v25, %s2179_s24  ;;  %v1955_v35 = vpop.f32.mrb[31].mxu1  ;;  %v1837_v51 = vmul.f32 -1.442695, %v1576_v39  ;;  %v2122_v39 = vld [vmem:[%s3143_s0 + $0x30] sm:$0xff] }
0x10f6   :  { %v2119_v35 = vld [vmem:[%s3143_s0] sm:$0xff] }
0x10f7   :  { %2100 = vpow2.f32 %v1837_v51  ;;  %v1680_v51 = vld [vmem:[#allocation2 + $0x38] sm:$0xff] }
0x1101   :  { %v2101_v62 = vpop.eup %2100 }
0x1102   :  { %v1580_v59 = vadd.f32 1.0, %v2101_v62 }
0x1104   :  { %2102 = vrcp.f32 %v1580_v59 }
0x110e   :  { %v2103_v47 = vpop.eup %2102 }
0x110f   :  { %v1595_v31 = vsub.f32 1.0, %v2103_v47  ;;  %v1601_v49 = vmul.f32 %v2103_v47, %v1526_v32 }
0x1167   :  { %v1586_v15 = vpop.permute.xlu0 %1585 }
0x1168   :  { %v1588_v52 = vmul.f32 %v2103_v47, %v1586_v15 }
0x116a   :  { %1590 = vrot.lane.b32.xlu1 %v1588_v52, %s2179_s24 }
0x11dc   :  { %v1591_v24 = vpop.permute.xlu1 %1590 }
0x11dd   :  { %v1593_v26 = vadd.f32 %v1591_v24, %v1528_v36  ;;  %v2120_v36 = vld [vmem:[%s3143_s0 + $0x10] sm:$0xff] }
0x11df   :  { %2104 = vtanh.f32 %v1593_v26 }
0x11e9   :  { %v2105_v11 = vpop.eup %2104 }
0x11ea   :  { %1597 = vrot.lane.b32.xlu0 %v2105_v11, %s2180_s26  ;;  %v2123_v11 = vld [vmem:[%s3143_s0 + $0x8] sm:$0xff] }
0x125c   :  { %v1598_v45 = vpop.permute.xlu0 %1597 }
0x125d   :  { %v1600_v33 = vmul.f32 %v1598_v45, %v1595_v31  ;;  %v2124_v31 = vld [vmem:[%s3143_s0 + $0x18] sm:$0xff]  ;;  %v2125_v45 = vld [vmem:[%s3143_s0 + $0x28] sm:$0xff] }
0x125f   :  { %v1602_v55 = vadd.f32 %v1601_v49, %v1600_v33  ;;  %v2126_v49 = vld [vmem:[%s3143_s0 + $0x38] sm:$0xff] }
0x1261   :  { %v1605_v21 = vpack.c.bf16 %v1602_v55, %v1602_v55 }
0x1263   :  { %1607 = vrot.lane.b32.xlu1 %v1605_v21, %s2180_s26 }
0x12d5   :  { %v1608_v44 = vpop.permute.xlu1 %1607 }
0x12d6   :  { %1961 = vmatmul.mubr.msk.bf16.vlgmr.msra.gmra.mrb[32].mxu0 %vm258_vm4, %v1608_v44 }
0x13a9   :  { %v1646_v46 = vpop.f32.mrb[32].mxu0 }
0x13aa   :  { %v1659_v28 = vadd.f32 %v1646_v46, %v2939_v48  ;;  %v1962_v6 = vpop.f32.mrb[33].mxu0  ;;  %v1652_v61 = vadd.f32 %v1646_v46, %v1604_v12 }
0x13ab   :  { %v1649_v16 = vpop.f32.mrb[34].mxu0 }
0x13ac   :  { %1661 = vrot.lane.b32.xlu0 %v1659_v28, %s2179_s24  ;;  %v1963_v20 = vpop.f32.mrb[35].mxu0  ;;  %v1839_v3 = vmul.f32 -1.442695, %v1652_v61 }
0x13ae   :  { %2106 = vpow2.f32 %v1839_v3 }
0x13b8   :  { %v2107_v43 = vpop.eup %2106 }
0x13b9   :  { %v1656_v0 = vadd.f32 1.0, %v2107_v43 }
0x13bb   :  { %2108 = vrcp.f32 %v1656_v0 }
0x13c5   :  { %v2109_v54 = vpop.eup %2108 }
0x13c6   :  { %v1671_v57 = vsub.f32 1.0, %v2109_v54  ;;  %v1677_v2 = vmul.f32 %v2109_v54, %v1602_v55 }
0x141e   :  { %v1662_v38 = vpop.permute.xlu0 %1661 }
0x141f   :  { %v1664_v40 = vmul.f32 %v2109_v54, %v1662_v38 }
0x1421   :  { %1666 = vrot.lane.b32.xlu1 %v1664_v40, %s2179_s24 }
0x1493   :  { %v1667_v8 = vpop.permute.xlu1 %1666 }
0x1494   :  { %v1669_v23 = vadd.f32 %v1667_v8, %v1604_v12 }
0x1496   :  { %2110 = vtanh.f32 %v1669_v23 }
0x14a0   :  { %v2111_v17 = vpop.eup %2110 }
0x14a1   :  { %1673 = vrot.lane.b32.xlu0 %v2111_v17, %s2180_s26 }
0x1513   :  { %v1674_v53 = vpop.permute.xlu0 %1673 }
0x1514   :  { %v1676_v4 = vmul.f32 %v1674_v53, %v1671_v57 }
0x1516   :  { %v3013_v63 = vadd.f32 %v1677_v2, %v1676_v4 }
0x1518   :  { %v1681_v32 = vpack.c.bf16 %v3013_v63, %v3013_v63 }
0x151a   :  { %1683 = vrot.lane.b32.xlu1 %v1681_v32, %s2180_s26 }
0x158c   :  { %v1684_v14 = vpop.permute.xlu1 %1683 }
0x158d   :  { %1969 = vmatmul.mubr.msk.bf16.vlgmr.msra.gmra.mrb[32].mxu1 %vm258_vm4, %v1684_v14 }
0x1660   :  { %v1722_v56 = vpop.f32.mrb[32].mxu1 }
0x1661   :  { %v1735_v18 = vadd.f32 %v1722_v56, %v2939_v48  ;;  %v1970_v25 = vpop.f32.mrb[33].mxu1  ;;  %v2121_v48 = vld [vmem:[%s3143_s0 + $0x20] sm:$0xff]  ;;  %v1728_v62 = vadd.f32 %v1722_v56, %v1680_v51  ;;  %s2182_s0 = smov [#allocation3]  }
0x1662   :  { %v1725_v10 = vpop.f32.mrb[34].mxu1 }
0x1663   :  { %1737 = vrot.lane.b32.xlu0 %v1735_v18, %s2179_s24  ;;  %v1971_v5 = vpop.f32.mrb[35].mxu1  ;;  %v1841_v59 = vmul.f32 -1.442695, %v1728_v62 }
0x1665   :  { %2112 = vpow2.f32 %v1841_v59 }
0x1667   :  { %996 = vrot.lane.b32.xlu0 %v2119_v35, %s2181_s28 }
0x166b   :  { %1000 = vrot.lane.b32.xlu0 %v2120_v36, %s2181_s28 }
0x166f   :  { %1004 = vrot.lane.b32.xlu0 %v2121_v48, %s2181_s28  ;;  %v2113_v47 = vpop.eup %2112 }
0x1670   :  { %v1732_v15 = vadd.f32 1.0, %v2113_v47 }
0x1672   :  { %2114 = vrcp.f32 %v1732_v15 }
0x1673   :  { %1008 = vrot.lane.b32.xlu0 %v2122_v39, %s2181_s28 }
0x167c   :  { %v3033_v52 = vpop.eup %2114 }
0x167d   :  { %v1753_v5 = vmul.f32 %v3033_v52, %v3013_v63 }
0x16d5   :  { %v1738_v24 = vpop.permute.xlu0 %1737 }
0x16d6   :  { %v1740_v26 = vmul.f32 %v3033_v52, %v1738_v24 }
0x16d8   :  { %1742 = vrot.lane.b32.xlu1 %v1740_v26, %s2179_s24 }
0x16d9   :  { %v997_v33 = vpop.permute.xlu0 %996 }
0x16da   :  { %v1020_v21 = vadd.f32 %v997_v33, %v2925_v34 }
0x16dc   :  { %998 = vrot.lane.b32.xlu1 %v2123_v11, %s2181_s28 }
0x16dd   :  { %v1001_v55 = vpop.permute.xlu0 %1000 }
0x16de   :  { %v1022_v46 = vadd.f32 %v2923_v29, %v1001_v55 }
0x16e0   :  { %1002 = vrot.lane.b32.xlu1 %v2124_v31, %s2181_s28 }
0x16e1   :  { %v1005_v44 = vpop.permute.xlu0 %1004 }
0x16e2   :  { %v1024_v28 = vadd.f32 %v1005_v44, %v2933_v13 }
0x16e4   :  { %1006 = vrot.lane.b32.xlu1 %v2125_v45, %s2181_s28 }
0x16e5   :  { %v1009_v6 = vpop.permute.xlu0 %1008 }
0x16e6   :  { %v1026_v16 = vadd.f32 %v2931_v30, %v1009_v6 }
0x16e8   :  { %1010 = vrot.lane.b32.xlu1 %v2126_v49, %s2181_s28 }
0x16ec   :  { %1036 = vrot.lane.b32.xlu1 %v2925_v34, %s2176_s8 }
0x16f0   :  { %1040 = vrot.lane.b32.xlu1 %v2923_v29, %s2176_s8 }
0x16f4   :  { %1044 = vrot.lane.b32.xlu1 %v2933_v13, %s2176_s8 }
0x16f8   :  { %1048 = vrot.lane.b32.xlu1 %v2931_v30, %s2176_s8 }
0x16fc   :  { %1068 = vrot.lane.b32.xlu1 %v1020_v21, %s2176_s8 }
0x1700   :  { %1072 = vrot.lane.b32.xlu1 %v1022_v46, %s2176_s8 }
0x1704   :  { %1076 = vrot.lane.b32.xlu1 %v1024_v28, %s2176_s8 }
0x1708   :  { %1080 = vrot.lane.b32.xlu1 %v1026_v16, %s2176_s8 }
0x174a   :  { %v1743_v20 = vpop.permute.xlu1 %1742 }
0x174b   :  { %v1745_v12 = vadd.f32 %v1743_v20, %v1680_v51 }
0x174d   :  { %2116 = vtanh.f32 %v1745_v12 }
0x174e   :  { %v999_v34 = vpop.permute.xlu1 %998 }
0x174f   :  { %v1021_v54 = vadd.f32 %v999_v34, %v2929_v9 }
0x1752   :  { %v1003_v61 = vpop.permute.xlu1 %1002 }
0x1753   :  { %v1023_v40 = vadd.f32 %v2927_v50, %v1003_v61 }
0x1756   :  { %v1007_v3 = vpop.permute.xlu1 %1006 }
0x1757   :  { %v2117_v43 = vpop.eup %2116 }
0x1758   :  { %1749 = vrot.lane.b32.xlu0 %v2117_v43, %s2180_s26 }
0x175a   :  { %v1011_v29 = vpop.permute.xlu1 %1010 }
0x175c   :  { %1038 = vrot.lane.b32.xlu0 %v2929_v9, %s2176_s8  ;;  %v1025_v9 = vadd.f32 %v1007_v3, %v2937_v19 }
0x175e   :  { %v1037_v13 = vpop.permute.xlu1 %1036 }
0x175f   :  { %v1092_v8 = vsel %vm258_vm4, %v2862_v37, %v1037_v13  ;;  %v1027_v37 = vadd.f32 %v2935_v60, %v1011_v29 }
0x1760   :  { %1042 = vrot.lane.b32.xlu0 %v2927_v50, %s2176_s8 }
0x1762   :  { %v1041_v30 = vpop.permute.xlu1 %1040 }
0x1763   :  { %v1094_v53 = vsel %vm258_vm4, %v2875_v7, %v1041_v30 }
0x1764   :  { %1046 = vrot.lane.b32.xlu0 %v2937_v19, %s2176_s8 }
0x1766   :  { %v1045_v0 = vpop.permute.xlu1 %1044 }
0x1767   :  { %v1096_v32 = vsel %vm258_vm4, %v2890_v27, %v1045_v0 }
0x1768   :  { %1050 = vrot.lane.b32.xlu0 %v2935_v60, %s2176_s8  ;;  %v1747_v60 = vsub.f32 1.0, %v3033_v52 }
0x176a   :  { %v1049_v38 = vpop.permute.xlu1 %1048 }
0x176b   :  { %v1098_v7 = vsel %vm258_vm4, %v2905_v58, %v1049_v38 }
0x176c   :  { %1070 = vrot.lane.b32.xlu0 %v1021_v54, %s2176_s8 }
0x176e   :  { %v1069_v23 = vpop.permute.xlu1 %1068 }
0x176f   :  { %v1101_v17 = vsel %vm1100_vm12, %v1092_v8, %v1069_v23 }
0x1770   :  { %v1110_v57 = vsel %vm1109_vm13, %v1101_v17, 0.0  ;;  %1074 = vrot.lane.b32.xlu0 %v1023_v40, %s2176_s8 }
0x1771   :  { %1118 = vst [vmem:[#allocation3] sm:$0xff] %v1110_v57 }
0x1772   :  { %v1073_v2 = vpop.permute.xlu1 %1072 }
0x1773   :  { %v1103_v4 = vsel %vm1100_vm12, %v1094_v53, %v1073_v2 }
0x1774   :  { %v1112_v50 = vsel %vm1109_vm13, %v1103_v4, 0.0  ;;  %1078 = vrot.lane.b32.xlu0 %v1025_v9, %s2176_s8 }
0x1775   :  { %1120 = vst [vmem:[#allocation3 + $0x10] sm:$0xff] %v1112_v50 }
0x1776   :  { %v1077_v14 = vpop.permute.xlu1 %1076 }
0x1777   :  { %v1105_v56 = vsel %vm1100_vm12, %v1096_v32, %v1077_v14 }
0x1778   :  { %v1114_v19 = vsel %vm1109_vm13, %v1105_v56, 0.0  ;;  %1082 = vrot.lane.b32.xlu0 %v1027_v37, %s2176_s8  ;;  %s1765_s8 = sshll.u32 %s2182_s0, 4  ;;  %s1766_s8 = int_to_ptr.vmem [resolvable:$true] %s1765_s8 }
0x1779   :  { %1122 = vst [vmem:[#allocation3 + $0x20] sm:$0xff] %v1114_v19  ;;  %s2127_s11 = scalar_lea.vmem %s1766_s8, 1024  ;;  %p2132_p1 = scmp.lt.s32.totalorder %s1766_s8, %s1766_s8 }
0x177a   :  { %v1081_v18 = vpop.permute.xlu1 %1080  ;;  %p2128_p0 = scmp.ne.s32.totalorder %s1766_s8, %s2127_s11  ;;  %p2133_p2 = scmp.lt.s32.totalorder %s2127_s11, %s2127_s11 }
0x177b   :  { %v1107_v25 = vsel %vm1100_vm12, %v1098_v7, %v1081_v18 }
0x177c   :  { %v1116_v10 = vsel %vm1109_vm13, %v1107_v25, 0.0  ;;  %p2134_p3 = por %p2133_p2, %p2132_p1 }
0x177d   :  { %1124 = vst [vmem:[#allocation3 + $0x30] sm:$0xff] %v1116_v10 }
0x177e   :  { %p2135_p4 = pnand %p2134_p3, %p2128_p0 }
0x17ca   :  { %v1750_v27 = vpop.permute.xlu0 %1749 }
0x17cb   :  { %v1752_v35 = vmul.f32 %v1750_v27, %v1747_v60 }
0x17cd   :  { %v1754_v36 = vadd.f32 %v1753_v5, %v1752_v35 }
0x17ce   :  { %v1039_v48 = vpop.permute.xlu0 %1038 }
0x17cf   :  { %1756 = vrot.lane.b32.xlu1 %v1754_v36, %s2180_s26  ;;  %v1093_v62 = vsel %vm258_vm4, %v2865_v42, %v1039_v48 }
0x17d2   :  { %v1043_v39 = vpop.permute.xlu0 %1042 }
0x17d3   :  { %v1095_v63 = vsel %vm258_vm4, %v2878_v1, %v1043_v39 }
0x17d6   :  { %v1047_v51 = vpop.permute.xlu0 %1046 }
0x17d7   :  { %v1097_v11 = vsel %vm258_vm4, %v2893_v22, %v1047_v51 }
0x17da   :  { %v1051_v58 = vpop.permute.xlu0 %1050 }
0x17db   :  { %v1099_v1 = vsel %vm258_vm4, %v2908_v41, %v1051_v58 }
0x17de   :  { %v1071_v59 = vpop.permute.xlu0 %1070 }
0x17df   :  { %v1102_v47 = vsel %vm1100_vm12, %v1093_v62, %v1071_v59 }
0x17e0   :  { %v1111_v15 = vsel %vm1109_vm13, %v1102_v47, 0.0 }
0x17e1   :  { %1119 = vst [vmem:[#allocation3 + $0x8] sm:$0xff] %v1111_v15 }
0x17e2   :  { %v1075_v52 = vpop.permute.xlu0 %1074 }
0x17e3   :  { %v1104_v24 = vsel %vm1100_vm12, %v1095_v63, %v1075_v52 }
0x17e4   :  { %v1113_v26 = vsel %vm1109_vm13, %v1104_v24, 0.0 }
0x17e5   :  { %1121 = vst [vmem:[#allocation3 + $0x18] sm:$0xff] %v1113_v26 }
0x17e6   :  { %v1079_v31 = vpop.permute.xlu0 %1078 }
0x17e7   :  { %v1106_v42 = vsel %vm1100_vm12, %v1097_v11, %v1079_v31 }
0x17e8   :  { %v1115_v45 = vsel %vm1109_vm13, %v1106_v42, 0.0 }
0x17e9   :  { %1123 = vst [vmem:[#allocation3 + $0x28] sm:$0xff] %v1115_v45 }
0x17ea   :  { %v1083_v49 = vpop.permute.xlu0 %1082 }
0x17eb   :  { %v1108_v33 = vsel %vm1100_vm12, %v1099_v1, %v1083_v49 }
0x17ec   :  { %v1117_v55 = vsel %vm1109_vm13, %v1108_v33, 0.0 }
0x17ed   :  { %1125 = vst [vmem:[#allocation3 + $0x38] sm:$0xff] %v1117_v55 }
0x17ee   :  { %2138 = shalt.err (!%p2135_p4)
}
0x17ef   :  { %s2139_s22 = scalar_lea.hbm %s3155_s12, 1024 }
0x17f0   :  { %p2140_p5 = scmp.ne.s32.totalorder %s3155_s12, %s2139_s22  ;;  %p2143_p6 = scmp.lt.u32.totalorder %s2139_s22, %s3155_s12 }
0x17f2   :  { %p2145_p7 = pnand %p2143_p6, %p2140_p5 }
0x17f4   :  { %2148 = shalt.err (!%p2145_p7)
}
0x17f5   :  { %s2183_s25 = smov 128   ;;  %s2184_s26 = smov 8  }
0x17f6   :  { %1771 = dma.vmem_to_hbm [thread:$0]  %s1766_s8, 1024, %s3155_s12, [#allocation4], %s2183_s25, %s2183_s25, %s2184_s26  }
0x17f7   :  { %s2185_s28 = smov [#allocation5]  }
0x17f8   :  { %s1778_s6 = sshll.u32 %s2185_s28, 4  ;;  %s1779_s6 = int_to_ptr.vmem [resolvable:$true] %s1778_s6 }
0x17f9   :  { %s2149_s7 = scalar_lea.vmem %s1779_s6, 128  ;;  %p2154_p9 = scmp.lt.s32.totalorder %s1779_s6, %s1779_s6 }
0x17fa   :  { %p2150_p8 = scmp.ne.s32.totalorder %s1779_s6, %s2149_s7  ;;  %p2155_p10 = scmp.lt.s32.totalorder %s2149_s7, %s2149_s7 }
0x17fc   :  { %p2156_p11 = por %p2155_p10, %p2154_p9 }
0x17fe   :  { %p2157_p12 = pnand %p2156_p11, %p2150_p8 }
0x1841   :  { %v1757_v22 = vpop.permute.xlu1 %1756 }
0x1842   :  { %1759 = vst.msk [vmem:[#allocation5] sm:$0xff] %vm258_vm4, %v1757_v22 }
0x1843   :  { %2160 = shalt.err (!%p2157_p12)
}
0x1844   :  { %s2161_s4 = scalar_lea.hbm %s3156_s13, 128 }
0x1845   :  { %p2162_p13 = scmp.ne.s32.totalorder %s3156_s13, %s2161_s4  ;;  %p2165_p0 = scmp.lt.u32.totalorder %s2161_s4, %s3156_s13 }
0x1847   :  { %p2167_p1 = pnand %p2165_p0, %p2162_p13 }
0x1849   :  { %2170 = shalt.err (!%p2167_p1)
}
0x184a   :  { %1781 = dma.vmem_to_hbm [thread:$0]  %s1779_s6, 128, %s3156_s13, [#allocation6]  }
0x184b   :  { %2171 = dma.done.wait [#allocation4], 1024  }
0x184c   :  { %2172 = vsyncadd [#allocation4], 4294966272 }
0x184d   :  { %2173 = dma.done.wait [#allocation6], 128  }
0x184e   :  { %2174 = vsyncadd [#allocation6], 4294967168 }
0x184f   :  { %1788 = vsyncpa [#allocation4], 1 }
0x1850   :  { %1789 = vsyncpa [#allocation6], 1 }

</bundles_post_ra>
